<compile_context>
chip_gen: v6e
topology: v6e:2x2x1
jax: 0.10.0
libtpu: 0.0.40
codegen_flags: <defaults>
</compile_context>

<pallas_src>
import jax
import jax.numpy as jnp
from jax import lax
from jax.experimental import pallas as pl
from jax.experimental.pallas import tpu as pltpu

# ----------------------------- model config (small) -----------------------------
DOMAIN_SET = {0, 1, 2, 3, 4}

EMBED_DIM = 16
VOCAB_SIZES = (10, 20, 30)                   # 3 sparse features
NUM_FIELDS = len(VOCAB_SIZES)
INPUT_DIM = EMBED_DIM * NUM_FIELDS           # 48
FCN_DIMS = (64, 32)                          # fcn_dims ctor arg
FCN_DIM = (INPUT_DIM,) + FCN_DIMS            # (48, 64, 32)
DOMAIN_NUM = 2
TASK_NUM = 2
N_BRANCH = DOMAIN_NUM * TASK_NUM             # 4 branch MLPs + heads
BATCH = 8
_LN_EPS = 1e-5

# ----------------------------- packed-slab layout --------------------------------
TOTAL_VOCAB = sum(VOCAB_SIZES)               # 60
K_EMB = ((TOTAL_VOCAB + 7) // 8) * 8         # 64: one-hot width (padded vocab rows)
W_EMB = 128                                  # padded embedding width (real = 48)
W_L1 = N_BRANCH * FCN_DIM[1]                 # 256: fused layer-1 output width
W_L2 = N_BRANCH * FCN_DIM[2]                 # 128: fused layer-2 / head width
SLAB_W = 256

# TODO(synk): kernel is specialized to len(fcn_dims)==2 and domain_num<=task_num (the
# config used here); a generic fcn_dims would need a generated slab layout.
assert len(FCN_DIMS) == 2 and W_L1 == SLAB_W and W_L2 == 128 and INPUT_DIM <= W_EMB
assert DOMAIN_NUM <= TASK_NUM

R_EMB = 0                                    # [64, 0:48]   one-hot gather matrix
R_W1 = R_EMB + K_EMB                         # [128, 256]   layer-1 (rows 48:128 zero)
R_W2 = R_W1 + W_EMB                          # [256, 0:128] layer-2 block-diagonal
R_WH1 = R_W2 + W_L1                          # [128, 0:128] head hidden block-diagonal
R_WH2 = R_WH1 + W_L2                         # [128, 0:4]   head output (col k = branch k)
SLAB_ROWS = R_WH2 + W_L2                     # 704
VEC_ROWS = 16

VMEM_SPEC = pl.BlockSpec(memory_space=pltpu.MemorySpace.VMEM)


# ----------------------------- fused Pallas kernel -------------------------------
def _fused_kernel(x_ref, w_ref, v_ref, out_ref):
    """Embedding gather -> 4x(MLP_N + head) block-diagonal -> sigmoid -> domain select."""
    batch = x_ref.shape[0]
    f32 = jnp.float32
    d1, d2 = FCN_DIM[1], FCN_DIM[2]

    xv = x_ref[...]                                                # [B, NUM_FIELDS+1] int32

    # ---- in-kernel embedding lookup: ONE one-hot matmul on the MXU ----
    col = lax.broadcasted_iota(jnp.int32, (batch, K_EMB), 1)
    onehot = jnp.zeros((batch, K_EMB), f32)
    off = 0
    for f in range(NUM_FIELDS):
        idx = xv[:, f:f + 1]                                       # [B, 1] int32
        onehot = onehot + (col == idx + off).astype(f32)
        off += VOCAB_SIZES[f]
    emb = jnp.dot(onehot.astype(jnp.bfloat16), w_ref[R_EMB:R_EMB + K_EMB, 0:W_EMB],
                  preferred_element_type=f32)                      # [B, 128], real 0:48

    def seg_ln_relu(h, g, be, seg):
        # Per-`seg`-wide block LayerNorm (+affine) + ReLU on fused [B, W] activations.
        # Exact f32 stats via iota-masked full-width reductions: no lane slicing/concat.
        lane = lax.broadcasted_iota(jnp.int32, h.shape, 1)
        n_seg = h.shape[-1] // seg
        masks = [(lane >= s * seg) & (lane < (s + 1) * seg) for s in range(n_seg)]
        inv = 1.0 / seg
        mu = jnp.zeros_like(h)
        for m in masks:
            mu = jnp.where(m, jnp.sum(jnp.where(m, h, 0.0), axis=-1, keepdims=True) * inv, mu)
        c = h - mu
        var = jnp.zeros_like(h)
        for m in masks:
            var = jnp.where(m, jnp.sum(jnp.where(m, c * c, 0.0), axis=-1, keepdims=True) * inv, var)
        return jnp.maximum(c * lax.rsqrt(var + _LN_EPS) * g + be, 0.0)

    # ---- layer 1: all 4 branches fused along lanes -> [B, 256] ----
    h = jnp.dot(emb.astype(jnp.bfloat16), w_ref[R_W1:R_W1 + W_EMB, :],
                preferred_element_type=f32) + v_ref[0:1, :]
    h = seg_ln_relu(h, v_ref[1:2, :], v_ref[2:3, :], d1)

    # ---- layer 2: block-diagonal [B,256]@[256,128] -> [B, 128] ----
    h = jnp.dot(h.astype(jnp.bfloat16), w_ref[R_W2:R_W2 + W_L1, 0:W_L2],
                preferred_element_type=f32) + v_ref[3:4, 0:W_L2]
    h = seg_ln_relu(h, v_ref[4:5, 0:W_L2], v_ref[5:6, 0:W_L2], d2)

    # ---- head hidden: block-diagonal [B,128]@[128,128] ----
    h = jnp.dot(h.astype(jnp.bfloat16), w_ref[R_WH1:R_WH1 + W_L2, 0:W_L2],
                preferred_element_type=f32) + v_ref[6:7, 0:W_L2]
    h = seg_ln_relu(h, v_ref[7:8, 0:W_L2], v_ref[8:9, 0:W_L2], d2)

    # ---- head output: all 4 logits from ONE matmul; one sigmoid (EUP) pass ----
    logits = jnp.dot(h.astype(jnp.bfloat16), w_ref[R_WH2:R_WH2 + W_L2, 0:W_L2],
                     preferred_element_type=f32) + v_ref[9:10, 0:W_L2]
    sig = jax.nn.sigmoid(logits)                                   # [B, 128]; cols >=4 unused

    # ---- torch-faithful domain-mask select (rows with dom >= domain_num -> 0) ----
    dom = xv[:, NUM_FIELDS:NUM_FIELDS + 1]                         # [B, 1] int32
    kcol = lax.broadcasted_iota(jnp.int32, sig.shape, 1)
    tcol = lax.broadcasted_iota(jnp.int32, (batch, TASK_NUM), 1)
    out = jnp.zeros((batch, TASK_NUM), f32)
    for t in range(TASK_NUM):
        acc = jnp.zeros((batch, 1), f32)
        for d in range(DOMAIN_NUM):
            k = d + TASK_NUM * t                                   # same index expr as torch
            sel = (kcol == k) & (dom == d)
            acc = acc + jnp.sum(jnp.where(sel, sig, 0.0), axis=-1, keepdims=True)
        out = jnp.where(tcol == t, acc, out)
    out_ref[...] = out                                             # single full [B, T] store


# ----------------------------- parameter init / packing --------------------------
def _linear_init(key, din, dout):
    kw, kb = jax.random.split(key)
    bound = 1.0 / (din ** 0.5)
    w = jax.random.uniform(kw, (din, dout), jnp.float32, -bound, bound)
    b = jax.random.uniform(kb, (dout,), jnp.float32, -bound, bound)
    return w, b


def init_params(key):
    """Structured per-branch params mirroring the torch module layout."""
    keys = iter(jax.random.split(key, 64))
    emb_tables = [jax.random.normal(next(keys), (v, EMBED_DIM), jnp.float32)
                  for v in VOCAB_SIZES]
    n_layers = len(FCN_DIM) - 1
    branches = []
    for _ in range(N_BRANCH):
        mlp = []
        for i in range(n_layers):
            w, b = _linear_init(next(keys), FCN_DIM[i], FCN_DIM[i + 1])
            g = jnp.ones((FCN_DIM[i + 1],), jnp.float32)           # LayerNorm defaults
            be = jnp.zeros((FCN_DIM[i + 1],), jnp.float32)
            mlp.append((w, b, g, be))
        wh1, bh1 = _linear_init(next(keys), FCN_DIM[-1], FCN_DIM[-1])
        gh = jnp.ones((FCN_DIM[-1],), jnp.float32)
        beh = jnp.zeros((FCN_DIM[-1],), jnp.float32)
        wh2, bh2 = _linear_init(next(keys), FCN_DIM[-1], 1)
        branches.append({"mlp": mlp, "head": (wh1, bh1, gh, beh, wh2, bh2)})
    return {"emb_tables": emb_tables, "branches": branches}


def pack_params(params):
    """Pack everything into one bf16 weight slab + one f32 bias/LN slab."""
    br = params["branches"]
    d0, d1, d2 = FCN_DIM

    w = jnp.zeros((SLAB_ROWS, SLAB_W), jnp.float32)
    # One-hot gather matrix: field f's table at rows [voff:voff+vocab], cols [16f:16(f+1)].
    voff = 0
    for f, tbl in enumerate(params["emb_tables"]):
        w = w.at[R_EMB + voff:R_EMB + voff + tbl.shape[0],
                 f * EMBED_DIM:(f + 1) * EMBED_DIM].set(tbl)
        voff += tbl.shape[0]
    # Layer 1: branch weights concatenated along the output dim -> [48, 256].
    w = w.at[R_W1:R_W1 + d0, :].set(jnp.concatenate([b["mlp"][0][0] for b in br], axis=1))
    # Layer 2 / head hidden / head output: block-diagonal placement per branch.
    for k, b in enumerate(br):
        w = w.at[R_W2 + k * d1:R_W2 + (k + 1) * d1, k * d2:(k + 1) * d2].set(b["mlp"][1][0])
        w = w.at[R_WH1 + k * d2:R_WH1 + (k + 1) * d2, k * d2:(k + 1) * d2].set(b["head"][0])
        w = w.at[R_WH2 + k * d2:R_WH2 + (k + 1) * d2, k:k + 1].set(b["head"][4])
    w_slab = w.astype(jnp.bfloat16)            # off-diagonal zeros stay exact in bf16

    v = jnp.zeros((VEC_ROWS, SLAB_W), jnp.float32)
    v = v.at[0, :W_L1].set(jnp.concatenate([b["mlp"][0][1] for b in br]))
    v = v.at[1, :W_L1].set(jnp.concatenate([b["mlp"][0][2] for b in br]))
    v = v.at[2, :W_L1].set(jnp.concatenate([b["mlp"][0][3] for b in br]))
    v = v.at[3, :W_L2].set(jnp.concatenate([b["mlp"][1][1] for b in br]))
    v = v.at[4, :W_L2].set(jnp.concatenate([b["mlp"][1][2] for b in br]))
    v = v.at[5, :W_L2].set(jnp.concatenate([b["mlp"][1][3] for b in br]))
    v = v.at[6, :W_L2].set(jnp.concatenate([b["head"][1] for b in br]))
    v = v.at[7, :W_L2].set(jnp.concatenate([b["head"][2] for b in br]))
    v = v.at[8, :W_L2].set(jnp.concatenate([b["head"][3] for b in br]))
    v = v.at[9, :N_BRANCH].set(jnp.concatenate([b["head"][5] for b in br]))
    return w_slab, v


# ----------------------------- forward pass --------------------------------------
def mlp7_forward(w_slab, v_slab, x):
    batch = x.shape[1]
    x_t = jnp.transpose(x).astype(jnp.int32)   # [B, NUM_FIELDS+1]; last col = domain id
    return pl.pallas_call(
        _fused_kernel,
        out_shape=jax.ShapeDtypeStruct((batch, TASK_NUM), jnp.float32),
        in_specs=[VMEM_SPEC, VMEM_SPEC, VMEM_SPEC],
        out_specs=VMEM_SPEC,
    )(x_t, w_slab, v_slab)


# ----------------------------- pure-JAX reference (torch-structured) -------------
def reference_forward(params, x):
    domain_id = x[-1, :]
    emb = jnp.concatenate(
        [params["emb_tables"][f][x[f, :]] for f in range(NUM_FIELDS)], axis=-1)

    def ln(h, g, b):
        mu = jnp.mean(h, axis=-1, keepdims=True)
        var = jnp.mean(jnp.square(h - mu), axis=-1, keepdims=True)
        return (h - mu) * lax.rsqrt(var + _LN_EPS) * g + b

    def bdot(a, w):
        return jnp.dot(a.astype(jnp.bfloat16), w.astype(jnp.bfloat16),
                       preferred_element_type=jnp.float32)

    masks, outs = [], []
    for t in range(TASK_NUM):
        for d in range(DOMAIN_NUM):
            masks.append(domain_id == d)
            br = params["branches"][d + TASK_NUM * t]
            h = emb
            for (w, b, g, be) in br["mlp"]:
                h = jnp.maximum(ln(bdot(h, w) + b, g, be), 0.0)
            wh1, bh1, gh, beh, wh2, bh2 = br["head"]
            h = jnp.maximum(ln(bdot(h, wh1) + bh1, gh, beh), 0.0)
            outs.append(jax.nn.sigmoid(bdot(h, wh2) + bh2))                  # [B, 1]

    final = jnp.zeros_like(outs[0])
    cols = []
    for t in range(TASK_NUM):
        for d in range(DOMAIN_NUM):
            k = d + TASK_NUM * t
            final = jnp.where(masks[k][:, None], outs[k], final)
        cols.append(final[:, 0])
    return jnp.stack(cols, axis=1)                                           # [B, T]


# ----------------------------- main ----------------------------------------------
if __name__ == "__main__":
    key = jax.random.PRNGKey(0)
    k_param, k_feat, k_dom = jax.random.split(key, 3)
    params = init_params(k_param)
    w_slab, v_slab = pack_params(params)

    # Input: [NUM_FIELDS + 1, BATCH] int32; last row = per-sample domain id.
    fkeys = jax.random.split(k_feat, NUM_FIELDS)
    feat_rows = [jax.random.randint(fkeys[f], (BATCH,), 0, VOCAB_SIZES[f])
                 for f in range(NUM_FIELDS)]
    dom_row = jax.random.randint(k_dom, (BATCH,), 0, DOMAIN_NUM)
    x = jnp.stack(feat_rows + [dom_row], axis=0).astype(jnp.int32)           # [4, 8]

    # Host-side equivalent of the torch DOMAIN_SET assert (eager .cpu() check in torch).
    assert set(int(v) for v in jax.device_get(x[-1, :])) <= DOMAIN_SET

    fwd = jax.jit(mlp7_forward)
    out = fwd(w_slab, v_slab, x)
    jax.block_until_ready(out)

    ref = reference_forward(params, x)
    assert out.shape == (BATCH, TASK_NUM)
    assert bool(jnp.all(jnp.isfinite(out)))
    assert bool(jnp.allclose(out, ref, atol=1e-2, rtol=1e-2)), \
        float(jnp.max(jnp.abs(out - ref)))
    print("KERNEL_OK")
</pallas_src>

<mosaic_0001>
module attributes {stable_mosaic.version = 11 : i64} {
  func.func @_fused_kernel(%arg0: memref<8x4xi32, #tpu.memory_space<vmem>>, %arg1: memref<704x256xbf16, #tpu.memory_space<vmem>>, %arg2: memref<16x256xf32, #tpu.memory_space<vmem>>, %arg3: memref<8x2xf32, #tpu.memory_space<vmem>>) attributes {dimension_semantics = [], scalar_prefetch = 0 : i64, scratch_operands = 0 : i64, tpu.core_type = #tpu.core_type<tc>} {
    %c0 = arith.constant 0 : index
    %c0_0 = arith.constant 0 : index
    %0 = vector.load %arg0[%c0, %c0_0] : memref<8x4xi32, #tpu.memory_space<vmem>>, vector<8x4xi32>
    %1 = tpu.iota {dimensions = array<i32: 1>} : vector<8x64xi32>
    %cst = arith.constant 0.000000e+00 : f32
    %2 = vector.broadcast %cst : f32 to vector<8x64xf32>
    %3 = vector.extract_strided_slice %0 {offsets = [0, 0], sizes = [8, 1], strides = [1, 1]} : vector<8x4xi32> to vector<8x1xi32>
    %c0_i32 = arith.constant 0 : i32
    %4 = vector.broadcast %c0_i32 : i32 to vector<8x1xi32>
    %5 = arith.addi %3, %4 : vector<8x1xi32>
    %6 = vector.broadcast %5 : vector<8x1xi32> to vector<8x64xi32>
    %7 = arith.cmpi eq, %1, %6 : vector<8x64xi32>
    %8 = arith.extui %7 : vector<8x64xi1> to vector<8x64xi32>
    %9 = arith.sitofp %8 : vector<8x64xi32> to vector<8x64xf32>
    %10 = arith.addf %2, %9 : vector<8x64xf32>
    %11 = vector.extract_strided_slice %0 {offsets = [0, 1], sizes = [8, 1], strides = [1, 1]} : vector<8x4xi32> to vector<8x1xi32>
    %c10_i32 = arith.constant 10 : i32
    %12 = vector.broadcast %c10_i32 : i32 to vector<8x1xi32>
    %13 = arith.addi %11, %12 : vector<8x1xi32>
    %14 = vector.broadcast %13 : vector<8x1xi32> to vector<8x64xi32>
    %15 = arith.cmpi eq, %1, %14 : vector<8x64xi32>
    %16 = arith.extui %15 : vector<8x64xi1> to vector<8x64xi32>
    %17 = arith.sitofp %16 : vector<8x64xi32> to vector<8x64xf32>
    %18 = arith.addf %10, %17 : vector<8x64xf32>
    %19 = vector.extract_strided_slice %0 {offsets = [0, 2], sizes = [8, 1], strides = [1, 1]} : vector<8x4xi32> to vector<8x1xi32>
    %c30_i32 = arith.constant 30 : i32
    %20 = vector.broadcast %c30_i32 : i32 to vector<8x1xi32>
    %21 = arith.addi %19, %20 : vector<8x1xi32>
    %22 = vector.broadcast %21 : vector<8x1xi32> to vector<8x64xi32>
    %23 = arith.cmpi eq, %1, %22 : vector<8x64xi32>
    %24 = arith.extui %23 : vector<8x64xi1> to vector<8x64xi32>
    %25 = arith.sitofp %24 : vector<8x64xi32> to vector<8x64xf32>
    %26 = arith.addf %18, %25 : vector<8x64xf32>
    %27 = arith.truncf %26 : vector<8x64xf32> to vector<8x64xbf16>
    %c0_1 = arith.constant 0 : index
    %c0_2 = arith.constant 0 : index
    %28 = vector.load %arg1[%c0_1, %c0_2] : memref<704x256xbf16, #tpu.memory_space<vmem>>, vector<64x128xbf16>
    %cst_3 = arith.constant dense<0.000000e+00> : vector<8x128xf32>
    %29 = tpu.matmul %27, %28, %cst_3 {dimension_numbers = #tpu.dot_dimension_numbers<[1], [0], [0], [1], [0, 0, 1, 1], [], []>} : vector<8x64xbf16>, vector<64x128xbf16>, vector<8x128xf32> -> vector<8x128xf32>
    %30 = arith.truncf %29 : vector<8x128xf32> to vector<8x128xbf16>
    %c64 = arith.constant 64 : index
    %c0_4 = arith.constant 0 : index
    %31 = vector.load %arg1[%c64, %c0_4] : memref<704x256xbf16, #tpu.memory_space<vmem>>, vector<128x256xbf16>
    %cst_5 = arith.constant dense<0.000000e+00> : vector<8x256xf32>
    %32 = tpu.matmul %30, %31, %cst_5 {dimension_numbers = #tpu.dot_dimension_numbers<[1], [0], [0], [1], [0, 0, 1, 1], [], []>} : vector<8x128xbf16>, vector<128x256xbf16>, vector<8x256xf32> -> vector<8x256xf32>
    %c0_6 = arith.constant 0 : index
    %c0_7 = arith.constant 0 : index
    %33 = vector.load %arg2[%c0_6, %c0_7] : memref<16x256xf32, #tpu.memory_space<vmem>>, vector<1x256xf32>
    %34 = vector.broadcast %33 : vector<1x256xf32> to vector<8x256xf32>
    %35 = arith.addf %32, %34 : vector<8x256xf32>
    %c1 = arith.constant 1 : index
    %c0_8 = arith.constant 0 : index
    %36 = vector.load %arg2[%c1, %c0_8] : memref<16x256xf32, #tpu.memory_space<vmem>>, vector<1x256xf32>
    %c2 = arith.constant 2 : index
    %c0_9 = arith.constant 0 : index
    %37 = vector.load %arg2[%c2, %c0_9] : memref<16x256xf32, #tpu.memory_space<vmem>>, vector<1x256xf32>
    %38 = tpu.iota {dimensions = array<i32: 1>} : vector<8x256xi32>
    %c0_i32_10 = arith.constant 0 : i32
    %39 = vector.broadcast %c0_i32_10 : i32 to vector<8x256xi32>
    %40 = arith.cmpi sge, %38, %39 : vector<8x256xi32>
    %c64_i32 = arith.constant 64 : i32
    %41 = vector.broadcast %c64_i32 : i32 to vector<8x256xi32>
    %42 = arith.cmpi slt, %38, %41 : vector<8x256xi32>
    %43 = arith.andi %40, %42 : vector<8x256xi1>
    %c64_i32_11 = arith.constant 64 : i32
    %44 = vector.broadcast %c64_i32_11 : i32 to vector<8x256xi32>
    %45 = arith.cmpi sge, %38, %44 : vector<8x256xi32>
    %c128_i32 = arith.constant 128 : i32
    %46 = vector.broadcast %c128_i32 : i32 to vector<8x256xi32>
    %47 = arith.cmpi slt, %38, %46 : vector<8x256xi32>
    %48 = arith.andi %45, %47 : vector<8x256xi1>
    %c128_i32_12 = arith.constant 128 : i32
    %49 = vector.broadcast %c128_i32_12 : i32 to vector<8x256xi32>
    %50 = arith.cmpi sge, %38, %49 : vector<8x256xi32>
    %c192_i32 = arith.constant 192 : i32
    %51 = vector.broadcast %c192_i32 : i32 to vector<8x256xi32>
    %52 = arith.cmpi slt, %38, %51 : vector<8x256xi32>
    %53 = arith.andi %50, %52 : vector<8x256xi1>
    %c192_i32_13 = arith.constant 192 : i32
    %54 = vector.broadcast %c192_i32_13 : i32 to vector<8x256xi32>
    %55 = arith.cmpi sge, %38, %54 : vector<8x256xi32>
    %c256_i32 = arith.constant 256 : i32
    %56 = vector.broadcast %c256_i32 : i32 to vector<8x256xi32>
    %57 = arith.cmpi slt, %38, %56 : vector<8x256xi32>
    %58 = arith.andi %55, %57 : vector<8x256xi1>
    %cst_14 = arith.constant 0.000000e+00 : f32
    %59 = vector.broadcast %cst_14 : f32 to vector<8x256xf32>
    %cst_15 = arith.constant 0.000000e+00 : f32
    %60 = vector.broadcast %cst_15 : f32 to vector<8x256xf32>
    %61 = arith.select %43, %35, %60 : vector<8x256xi1>, vector<8x256xf32>
    %cst_16 = arith.constant dense<0.000000e+00> : vector<8xf32>
    %62 = vector.multi_reduction <add>, %61, %cst_16 [1] : vector<8x256xf32> to vector<8xf32>
    %63 = vector.shape_cast %62 : vector<8xf32> to vector<8x1xf32>
    %cst_17 = arith.constant 1.562500e-02 : f32
    %64 = vector.broadcast %cst_17 : f32 to vector<8x1xf32>
    %65 = arith.mulf %63, %64 : vector<8x1xf32>
    %66 = vector.shape_cast %65 : vector<8x1xf32> to vector<8x1xf32>
    %67 = vector.broadcast %66 : vector<8x1xf32> to vector<8x256xf32>
    %68 = arith.select %43, %67, %59 : vector<8x256xi1>, vector<8x256xf32>
    %cst_18 = arith.constant 0.000000e+00 : f32
    %69 = vector.broadcast %cst_18 : f32 to vector<8x256xf32>
    %70 = arith.select %48, %35, %69 : vector<8x256xi1>, vector<8x256xf32>
    %cst_19 = arith.constant dense<0.000000e+00> : vector<8xf32>
    %71 = vector.multi_reduction <add>, %70, %cst_19 [1] : vector<8x256xf32> to vector<8xf32>
    %72 = vector.shape_cast %71 : vector<8xf32> to vector<8x1xf32>
    %cst_20 = arith.constant 1.562500e-02 : f32
    %73 = vector.broadcast %cst_20 : f32 to vector<8x1xf32>
    %74 = arith.mulf %72, %73 : vector<8x1xf32>
    %75 = vector.shape_cast %74 : vector<8x1xf32> to vector<8x1xf32>
    %76 = vector.broadcast %75 : vector<8x1xf32> to vector<8x256xf32>
    %77 = arith.select %48, %76, %68 : vector<8x256xi1>, vector<8x256xf32>
    %cst_21 = arith.constant 0.000000e+00 : f32
    %78 = vector.broadcast %cst_21 : f32 to vector<8x256xf32>
    %79 = arith.select %53, %35, %78 : vector<8x256xi1>, vector<8x256xf32>
    %cst_22 = arith.constant dense<0.000000e+00> : vector<8xf32>
    %80 = vector.multi_reduction <add>, %79, %cst_22 [1] : vector<8x256xf32> to vector<8xf32>
    %81 = vector.shape_cast %80 : vector<8xf32> to vector<8x1xf32>
    %cst_23 = arith.constant 1.562500e-02 : f32
    %82 = vector.broadcast %cst_23 : f32 to vector<8x1xf32>
    %83 = arith.mulf %81, %82 : vector<8x1xf32>
    %84 = vector.shape_cast %83 : vector<8x1xf32> to vector<8x1xf32>
    %85 = vector.broadcast %84 : vector<8x1xf32> to vector<8x256xf32>
    %86 = arith.select %53, %85, %77 : vector<8x256xi1>, vector<8x256xf32>
    %cst_24 = arith.constant 0.000000e+00 : f32
    %87 = vector.broadcast %cst_24 : f32 to vector<8x256xf32>
    %88 = arith.select %58, %35, %87 : vector<8x256xi1>, vector<8x256xf32>
    %cst_25 = arith.constant dense<0.000000e+00> : vector<8xf32>
    %89 = vector.multi_reduction <add>, %88, %cst_25 [1] : vector<8x256xf32> to vector<8xf32>
    %90 = vector.shape_cast %89 : vector<8xf32> to vector<8x1xf32>
    %cst_26 = arith.constant 1.562500e-02 : f32
    %91 = vector.broadcast %cst_26 : f32 to vector<8x1xf32>
    %92 = arith.mulf %90, %91 : vector<8x1xf32>
    %93 = vector.shape_cast %92 : vector<8x1xf32> to vector<8x1xf32>
    %94 = vector.broadcast %93 : vector<8x1xf32> to vector<8x256xf32>
    %95 = arith.select %58, %94, %86 : vector<8x256xi1>, vector<8x256xf32>
    %96 = arith.subf %35, %95 : vector<8x256xf32>
    %cst_27 = arith.constant 0.000000e+00 : f32
    %97 = vector.broadcast %cst_27 : f32 to vector<8x256xf32>
    %98 = arith.mulf %96, %96 : vector<8x256xf32>
    %cst_28 = arith.constant 0.000000e+00 : f32
    %99 = vector.broadcast %cst_28 : f32 to vector<8x256xf32>
    %100 = arith.select %43, %98, %99 : vector<8x256xi1>, vector<8x256xf32>
    %cst_29 = arith.constant dense<0.000000e+00> : vector<8xf32>
    %101 = vector.multi_reduction <add>, %100, %cst_29 [1] : vector<8x256xf32> to vector<8xf32>
    %102 = vector.shape_cast %101 : vector<8xf32> to vector<8x1xf32>
    %cst_30 = arith.constant 1.562500e-02 : f32
    %103 = vector.broadcast %cst_30 : f32 to vector<8x1xf32>
    %104 = arith.mulf %102, %103 : vector<8x1xf32>
    %105 = vector.shape_cast %104 : vector<8x1xf32> to vector<8x1xf32>
    %106 = vector.broadcast %105 : vector<8x1xf32> to vector<8x256xf32>
    %107 = arith.select %43, %106, %97 : vector<8x256xi1>, vector<8x256xf32>
    %108 = arith.mulf %96, %96 : vector<8x256xf32>
    %cst_31 = arith.constant 0.000000e+00 : f32
    %109 = vector.broadcast %cst_31 : f32 to vector<8x256xf32>
    %110 = arith.select %48, %108, %109 : vector<8x256xi1>, vector<8x256xf32>
    %cst_32 = arith.constant dense<0.000000e+00> : vector<8xf32>
    %111 = vector.multi_reduction <add>, %110, %cst_32 [1] : vector<8x256xf32> to vector<8xf32>
    %112 = vector.shape_cast %111 : vector<8xf32> to vector<8x1xf32>
    %cst_33 = arith.constant 1.562500e-02 : f32
    %113 = vector.broadcast %cst_33 : f32 to vector<8x1xf32>
    %114 = arith.mulf %112, %113 : vector<8x1xf32>
    %115 = vector.shape_cast %114 : vector<8x1xf32> to vector<8x1xf32>
    %116 = vector.broadcast %115 : vector<8x1xf32> to vector<8x256xf32>
    %117 = arith.select %48, %116, %107 : vector<8x256xi1>, vector<8x256xf32>
    %118 = arith.mulf %96, %96 : vector<8x256xf32>
    %cst_34 = arith.constant 0.000000e+00 : f32
    %119 = vector.broadcast %cst_34 : f32 to vector<8x256xf32>
    %120 = arith.select %53, %118, %119 : vector<8x256xi1>, vector<8x256xf32>
    %cst_35 = arith.constant dense<0.000000e+00> : vector<8xf32>
    %121 = vector.multi_reduction <add>, %120, %cst_35 [1] : vector<8x256xf32> to vector<8xf32>
    %122 = vector.shape_cast %121 : vector<8xf32> to vector<8x1xf32>
    %cst_36 = arith.constant 1.562500e-02 : f32
    %123 = vector.broadcast %cst_36 : f32 to vector<8x1xf32>
    %124 = arith.mulf %122, %123 : vector<8x1xf32>
    %125 = vector.shape_cast %124 : vector<8x1xf32> to vector<8x1xf32>
    %126 = vector.broadcast %125 : vector<8x1xf32> to vector<8x256xf32>
    %127 = arith.select %53, %126, %117 : vector<8x256xi1>, vector<8x256xf32>
    %128 = arith.mulf %96, %96 : vector<8x256xf32>
    %cst_37 = arith.constant 0.000000e+00 : f32
    %129 = vector.broadcast %cst_37 : f32 to vector<8x256xf32>
    %130 = arith.select %58, %128, %129 : vector<8x256xi1>, vector<8x256xf32>
    %cst_38 = arith.constant dense<0.000000e+00> : vector<8xf32>
    %131 = vector.multi_reduction <add>, %130, %cst_38 [1] : vector<8x256xf32> to vector<8xf32>
    %132 = vector.shape_cast %131 : vector<8xf32> to vector<8x1xf32>
    %cst_39 = arith.constant 1.562500e-02 : f32
    %133 = vector.broadcast %cst_39 : f32 to vector<8x1xf32>
    %134 = arith.mulf %132, %133 : vector<8x1xf32>
    %135 = vector.shape_cast %134 : vector<8x1xf32> to vector<8x1xf32>
    %136 = vector.broadcast %135 : vector<8x1xf32> to vector<8x256xf32>
    %137 = arith.select %58, %136, %127 : vector<8x256xi1>, vector<8x256xf32>
    %cst_40 = arith.constant 9.99999974E-6 : f32
    %138 = vector.broadcast %cst_40 : f32 to vector<8x256xf32>
    %139 = arith.addf %137, %138 : vector<8x256xf32>
    %140 = math.rsqrt %139 : vector<8x256xf32>
    %141 = arith.mulf %96, %140 : vector<8x256xf32>
    %142 = vector.broadcast %36 : vector<1x256xf32> to vector<8x256xf32>
    %143 = arith.mulf %141, %142 : vector<8x256xf32>
    %144 = vector.broadcast %37 : vector<1x256xf32> to vector<8x256xf32>
    %145 = arith.addf %143, %144 : vector<8x256xf32>
    %cst_41 = arith.constant 0.000000e+00 : f32
    %146 = vector.broadcast %cst_41 : f32 to vector<8x256xf32>
    %147 = arith.maximumf %145, %146 : vector<8x256xf32>
    %148 = arith.truncf %147 : vector<8x256xf32> to vector<8x256xbf16>
    %c192 = arith.constant 192 : index
    %c0_42 = arith.constant 0 : index
    %149 = vector.load %arg1[%c192, %c0_42] : memref<704x256xbf16, #tpu.memory_space<vmem>>, vector<256x128xbf16>
    %cst_43 = arith.constant dense<0.000000e+00> : vector<8x128xf32>
    %150 = tpu.matmul %148, %149, %cst_43 {dimension_numbers = #tpu.dot_dimension_numbers<[1], [0], [0], [1], [0, 0, 1, 1], [], []>} : vector<8x256xbf16>, vector<256x128xbf16>, vector<8x128xf32> -> vector<8x128xf32>
    %c3 = arith.constant 3 : index
    %c0_44 = arith.constant 0 : index
    %151 = vector.load %arg2[%c3, %c0_44] : memref<16x256xf32, #tpu.memory_space<vmem>>, vector<1x128xf32>
    %152 = vector.broadcast %151 : vector<1x128xf32> to vector<8x128xf32>
    %153 = arith.addf %150, %152 : vector<8x128xf32>
    %c4 = arith.constant 4 : index
    %c0_45 = arith.constant 0 : index
    %154 = vector.load %arg2[%c4, %c0_45] : memref<16x256xf32, #tpu.memory_space<vmem>>, vector<1x128xf32>
    %c5 = arith.constant 5 : index
    %c0_46 = arith.constant 0 : index
    %155 = vector.load %arg2[%c5, %c0_46] : memref<16x256xf32, #tpu.memory_space<vmem>>, vector<1x128xf32>
    %156 = tpu.iota {dimensions = array<i32: 1>} : vector<8x128xi32>
    %c0_i32_47 = arith.constant 0 : i32
    %157 = vector.broadcast %c0_i32_47 : i32 to vector<8x128xi32>
    %158 = arith.cmpi sge, %156, %157 : vector<8x128xi32>
    %c32_i32 = arith.constant 32 : i32
    %159 = vector.broadcast %c32_i32 : i32 to vector<8x128xi32>
    %160 = arith.cmpi slt, %156, %159 : vector<8x128xi32>
    %161 = arith.andi %158, %160 : vector<8x128xi1>
    %c32_i32_48 = arith.constant 32 : i32
    %162 = vector.broadcast %c32_i32_48 : i32 to vector<8x128xi32>
    %163 = arith.cmpi sge, %156, %162 : vector<8x128xi32>
    %c64_i32_49 = arith.constant 64 : i32
    %164 = vector.broadcast %c64_i32_49 : i32 to vector<8x128xi32>
    %165 = arith.cmpi slt, %156, %164 : vector<8x128xi32>
    %166 = arith.andi %163, %165 : vector<8x128xi1>
    %c64_i32_50 = arith.constant 64 : i32
    %167 = vector.broadcast %c64_i32_50 : i32 to vector<8x128xi32>
    %168 = arith.cmpi sge, %156, %167 : vector<8x128xi32>
    %c96_i32 = arith.constant 96 : i32
    %169 = vector.broadcast %c96_i32 : i32 to vector<8x128xi32>
    %170 = arith.cmpi slt, %156, %169 : vector<8x128xi32>
    %171 = arith.andi %168, %170 : vector<8x128xi1>
    %c96_i32_51 = arith.constant 96 : i32
    %172 = vector.broadcast %c96_i32_51 : i32 to vector<8x128xi32>
    %173 = arith.cmpi sge, %156, %172 : vector<8x128xi32>
    %c128_i32_52 = arith.constant 128 : i32
    %174 = vector.broadcast %c128_i32_52 : i32 to vector<8x128xi32>
    %175 = arith.cmpi slt, %156, %174 : vector<8x128xi32>
    %176 = arith.andi %173, %175 : vector<8x128xi1>
    %cst_53 = arith.constant 0.000000e+00 : f32
    %177 = vector.broadcast %cst_53 : f32 to vector<8x128xf32>
    %cst_54 = arith.constant 0.000000e+00 : f32
    %178 = vector.broadcast %cst_54 : f32 to vector<8x128xf32>
    %179 = arith.select %161, %153, %178 : vector<8x128xi1>, vector<8x128xf32>
    %cst_55 = arith.constant dense<0.000000e+00> : vector<8xf32>
    %180 = vector.multi_reduction <add>, %179, %cst_55 [1] : vector<8x128xf32> to vector<8xf32>
    %181 = vector.shape_cast %180 : vector<8xf32> to vector<8x1xf32>
    %cst_56 = arith.constant 3.125000e-02 : f32
    %182 = vector.broadcast %cst_56 : f32 to vector<8x1xf32>
    %183 = arith.mulf %181, %182 : vector<8x1xf32>
    %184 = vector.shape_cast %183 : vector<8x1xf32> to vector<8x1xf32>
    %185 = vector.broadcast %184 : vector<8x1xf32> to vector<8x128xf32>
    %186 = arith.select %161, %185, %177 : vector<8x128xi1>, vector<8x128xf32>
    %cst_57 = arith.constant 0.000000e+00 : f32
    %187 = vector.broadcast %cst_57 : f32 to vector<8x128xf32>
    %188 = arith.select %166, %153, %187 : vector<8x128xi1>, vector<8x128xf32>
    %cst_58 = arith.constant dense<0.000000e+00> : vector<8xf32>
    %189 = vector.multi_reduction <add>, %188, %cst_58 [1] : vector<8x128xf32> to vector<8xf32>
    %190 = vector.shape_cast %189 : vector<8xf32> to vector<8x1xf32>
    %cst_59 = arith.constant 3.125000e-02 : f32
    %191 = vector.broadcast %cst_59 : f32 to vector<8x1xf32>
    %192 = arith.mulf %190, %191 : vector<8x1xf32>
    %193 = vector.shape_cast %192 : vector<8x1xf32> to vector<8x1xf32>
    %194 = vector.broadcast %193 : vector<8x1xf32> to vector<8x128xf32>
    %195 = arith.select %166, %194, %186 : vector<8x128xi1>, vector<8x128xf32>
    %cst_60 = arith.constant 0.000000e+00 : f32
    %196 = vector.broadcast %cst_60 : f32 to vector<8x128xf32>
    %197 = arith.select %171, %153, %196 : vector<8x128xi1>, vector<8x128xf32>
    %cst_61 = arith.constant dense<0.000000e+00> : vector<8xf32>
    %198 = vector.multi_reduction <add>, %197, %cst_61 [1] : vector<8x128xf32> to vector<8xf32>
    %199 = vector.shape_cast %198 : vector<8xf32> to vector<8x1xf32>
    %cst_62 = arith.constant 3.125000e-02 : f32
    %200 = vector.broadcast %cst_62 : f32 to vector<8x1xf32>
    %201 = arith.mulf %199, %200 : vector<8x1xf32>
    %202 = vector.shape_cast %201 : vector<8x1xf32> to vector<8x1xf32>
    %203 = vector.broadcast %202 : vector<8x1xf32> to vector<8x128xf32>
    %204 = arith.select %171, %203, %195 : vector<8x128xi1>, vector<8x128xf32>
    %cst_63 = arith.constant 0.000000e+00 : f32
    %205 = vector.broadcast %cst_63 : f32 to vector<8x128xf32>
    %206 = arith.select %176, %153, %205 : vector<8x128xi1>, vector<8x128xf32>
    %cst_64 = arith.constant dense<0.000000e+00> : vector<8xf32>
    %207 = vector.multi_reduction <add>, %206, %cst_64 [1] : vector<8x128xf32> to vector<8xf32>
    %208 = vector.shape_cast %207 : vector<8xf32> to vector<8x1xf32>
    %cst_65 = arith.constant 3.125000e-02 : f32
    %209 = vector.broadcast %cst_65 : f32 to vector<8x1xf32>
    %210 = arith.mulf %208, %209 : vector<8x1xf32>
    %211 = vector.shape_cast %210 : vector<8x1xf32> to vector<8x1xf32>
    %212 = vector.broadcast %211 : vector<8x1xf32> to vector<8x128xf32>
    %213 = arith.select %176, %212, %204 : vector<8x128xi1>, vector<8x128xf32>
    %214 = arith.subf %153, %213 : vector<8x128xf32>
    %cst_66 = arith.constant 0.000000e+00 : f32
    %215 = vector.broadcast %cst_66 : f32 to vector<8x128xf32>
    %216 = arith.mulf %214, %214 : vector<8x128xf32>
    %cst_67 = arith.constant 0.000000e+00 : f32
    %217 = vector.broadcast %cst_67 : f32 to vector<8x128xf32>
    %218 = arith.select %161, %216, %217 : vector<8x128xi1>, vector<8x128xf32>
    %cst_68 = arith.constant dense<0.000000e+00> : vector<8xf32>
    %219 = vector.multi_reduction <add>, %218, %cst_68 [1] : vector<8x128xf32> to vector<8xf32>
    %220 = vector.shape_cast %219 : vector<8xf32> to vector<8x1xf32>
    %cst_69 = arith.constant 3.125000e-02 : f32
    %221 = vector.broadcast %cst_69 : f32 to vector<8x1xf32>
    %222 = arith.mulf %220, %221 : vector<8x1xf32>
    %223 = vector.shape_cast %222 : vector<8x1xf32> to vector<8x1xf32>
    %224 = vector.broadcast %223 : vector<8x1xf32> to vector<8x128xf32>
    %225 = arith.select %161, %224, %215 : vector<8x128xi1>, vector<8x128xf32>
    %226 = arith.mulf %214, %214 : vector<8x128xf32>
    %cst_70 = arith.constant 0.000000e+00 : f32
    %227 = vector.broadcast %cst_70 : f32 to vector<8x128xf32>
    %228 = arith.select %166, %226, %227 : vector<8x128xi1>, vector<8x128xf32>
    %cst_71 = arith.constant dense<0.000000e+00> : vector<8xf32>
    %229 = vector.multi_reduction <add>, %228, %cst_71 [1] : vector<8x128xf32> to vector<8xf32>
    %230 = vector.shape_cast %229 : vector<8xf32> to vector<8x1xf32>
    %cst_72 = arith.constant 3.125000e-02 : f32
    %231 = vector.broadcast %cst_72 : f32 to vector<8x1xf32>
    %232 = arith.mulf %230, %231 : vector<8x1xf32>
    %233 = vector.shape_cast %232 : vector<8x1xf32> to vector<8x1xf32>
    %234 = vector.broadcast %233 : vector<8x1xf32> to vector<8x128xf32>
    %235 = arith.select %166, %234, %225 : vector<8x128xi1>, vector<8x128xf32>
    %236 = arith.mulf %214, %214 : vector<8x128xf32>
    %cst_73 = arith.constant 0.000000e+00 : f32
    %237 = vector.broadcast %cst_73 : f32 to vector<8x128xf32>
    %238 = arith.select %171, %236, %237 : vector<8x128xi1>, vector<8x128xf32>
    %cst_74 = arith.constant dense<0.000000e+00> : vector<8xf32>
    %239 = vector.multi_reduction <add>, %238, %cst_74 [1] : vector<8x128xf32> to vector<8xf32>
    %240 = vector.shape_cast %239 : vector<8xf32> to vector<8x1xf32>
    %cst_75 = arith.constant 3.125000e-02 : f32
    %241 = vector.broadcast %cst_75 : f32 to vector<8x1xf32>
    %242 = arith.mulf %240, %241 : vector<8x1xf32>
    %243 = vector.shape_cast %242 : vector<8x1xf32> to vector<8x1xf32>
    %244 = vector.broadcast %243 : vector<8x1xf32> to vector<8x128xf32>
    %245 = arith.select %171, %244, %235 : vector<8x128xi1>, vector<8x128xf32>
    %246 = arith.mulf %214, %214 : vector<8x128xf32>
    %cst_76 = arith.constant 0.000000e+00 : f32
    %247 = vector.broadcast %cst_76 : f32 to vector<8x128xf32>
    %248 = arith.select %176, %246, %247 : vector<8x128xi1>, vector<8x128xf32>
    %cst_77 = arith.constant dense<0.000000e+00> : vector<8xf32>
    %249 = vector.multi_reduction <add>, %248, %cst_77 [1] : vector<8x128xf32> to vector<8xf32>
    %250 = vector.shape_cast %249 : vector<8xf32> to vector<8x1xf32>
    %cst_78 = arith.constant 3.125000e-02 : f32
    %251 = vector.broadcast %cst_78 : f32 to vector<8x1xf32>
    %252 = arith.mulf %250, %251 : vector<8x1xf32>
    %253 = vector.shape_cast %252 : vector<8x1xf32> to vector<8x1xf32>
    %254 = vector.broadcast %253 : vector<8x1xf32> to vector<8x128xf32>
    %255 = arith.select %176, %254, %245 : vector<8x128xi1>, vector<8x128xf32>
    %cst_79 = arith.constant 9.99999974E-6 : f32
    %256 = vector.broadcast %cst_79 : f32 to vector<8x128xf32>
    %257 = arith.addf %255, %256 : vector<8x128xf32>
    %258 = math.rsqrt %257 : vector<8x128xf32>
    %259 = arith.mulf %214, %258 : vector<8x128xf32>
    %260 = vector.broadcast %154 : vector<1x128xf32> to vector<8x128xf32>
    %261 = arith.mulf %259, %260 : vector<8x128xf32>
    %262 = vector.broadcast %155 : vector<1x128xf32> to vector<8x128xf32>
    %263 = arith.addf %261, %262 : vector<8x128xf32>
    %cst_80 = arith.constant 0.000000e+00 : f32
    %264 = vector.broadcast %cst_80 : f32 to vector<8x128xf32>
    %265 = arith.maximumf %263, %264 : vector<8x128xf32>
    %266 = arith.truncf %265 : vector<8x128xf32> to vector<8x128xbf16>
    %c448 = arith.constant 448 : index
    %c0_81 = arith.constant 0 : index
    %267 = vector.load %arg1[%c448, %c0_81] : memref<704x256xbf16, #tpu.memory_space<vmem>>, vector<128x128xbf16>
    %cst_82 = arith.constant dense<0.000000e+00> : vector<8x128xf32>
    %268 = tpu.matmul %266, %267, %cst_82 {dimension_numbers = #tpu.dot_dimension_numbers<[1], [0], [0], [1], [0, 0, 1, 1], [], []>} : vector<8x128xbf16>, vector<128x128xbf16>, vector<8x128xf32> -> vector<8x128xf32>
    %c6 = arith.constant 6 : index
    %c0_83 = arith.constant 0 : index
    %269 = vector.load %arg2[%c6, %c0_83] : memref<16x256xf32, #tpu.memory_space<vmem>>, vector<1x128xf32>
    %270 = vector.broadcast %269 : vector<1x128xf32> to vector<8x128xf32>
    %271 = arith.addf %268, %270 : vector<8x128xf32>
    %c7 = arith.constant 7 : index
    %c0_84 = arith.constant 0 : index
    %272 = vector.load %arg2[%c7, %c0_84] : memref<16x256xf32, #tpu.memory_space<vmem>>, vector<1x128xf32>
    %c8 = arith.constant 8 : index
    %c0_85 = arith.constant 0 : index
    %273 = vector.load %arg2[%c8, %c0_85] : memref<16x256xf32, #tpu.memory_space<vmem>>, vector<1x128xf32>
    %274 = tpu.iota {dimensions = array<i32: 1>} : vector<8x128xi32>
    %c0_i32_86 = arith.constant 0 : i32
    %275 = vector.broadcast %c0_i32_86 : i32 to vector<8x128xi32>
    %276 = arith.cmpi sge, %274, %275 : vector<8x128xi32>
    %c32_i32_87 = arith.constant 32 : i32
    %277 = vector.broadcast %c32_i32_87 : i32 to vector<8x128xi32>
    %278 = arith.cmpi slt, %274, %277 : vector<8x128xi32>
    %279 = arith.andi %276, %278 : vector<8x128xi1>
    %c32_i32_88 = arith.constant 32 : i32
    %280 = vector.broadcast %c32_i32_88 : i32 to vector<8x128xi32>
    %281 = arith.cmpi sge, %274, %280 : vector<8x128xi32>
    %c64_i32_89 = arith.constant 64 : i32
    %282 = vector.broadcast %c64_i32_89 : i32 to vector<8x128xi32>
    %283 = arith.cmpi slt, %274, %282 : vector<8x128xi32>
    %284 = arith.andi %281, %283 : vector<8x128xi1>
    %c64_i32_90 = arith.constant 64 : i32
    %285 = vector.broadcast %c64_i32_90 : i32 to vector<8x128xi32>
    %286 = arith.cmpi sge, %274, %285 : vector<8x128xi32>
    %c96_i32_91 = arith.constant 96 : i32
    %287 = vector.broadcast %c96_i32_91 : i32 to vector<8x128xi32>
    %288 = arith.cmpi slt, %274, %287 : vector<8x128xi32>
    %289 = arith.andi %286, %288 : vector<8x128xi1>
    %c96_i32_92 = arith.constant 96 : i32
    %290 = vector.broadcast %c96_i32_92 : i32 to vector<8x128xi32>
    %291 = arith.cmpi sge, %274, %290 : vector<8x128xi32>
    %c128_i32_93 = arith.constant 128 : i32
    %292 = vector.broadcast %c128_i32_93 : i32 to vector<8x128xi32>
    %293 = arith.cmpi slt, %274, %292 : vector<8x128xi32>
    %294 = arith.andi %291, %293 : vector<8x128xi1>
    %cst_94 = arith.constant 0.000000e+00 : f32
    %295 = vector.broadcast %cst_94 : f32 to vector<8x128xf32>
    %cst_95 = arith.constant 0.000000e+00 : f32
    %296 = vector.broadcast %cst_95 : f32 to vector<8x128xf32>
    %297 = arith.select %279, %271, %296 : vector<8x128xi1>, vector<8x128xf32>
    %cst_96 = arith.constant dense<0.000000e+00> : vector<8xf32>
    %298 = vector.multi_reduction <add>, %297, %cst_96 [1] : vector<8x128xf32> to vector<8xf32>
    %299 = vector.shape_cast %298 : vector<8xf32> to vector<8x1xf32>
    %cst_97 = arith.constant 3.125000e-02 : f32
    %300 = vector.broadcast %cst_97 : f32 to vector<8x1xf32>
    %301 = arith.mulf %299, %300 : vector<8x1xf32>
    %302 = vector.shape_cast %301 : vector<8x1xf32> to vector<8x1xf32>
    %303 = vector.broadcast %302 : vector<8x1xf32> to vector<8x128xf32>
    %304 = arith.select %279, %303, %295 : vector<8x128xi1>, vector<8x128xf32>
    %cst_98 = arith.constant 0.000000e+00 : f32
    %305 = vector.broadcast %cst_98 : f32 to vector<8x128xf32>
    %306 = arith.select %284, %271, %305 : vector<8x128xi1>, vector<8x128xf32>
    %cst_99 = arith.constant dense<0.000000e+00> : vector<8xf32>
    %307 = vector.multi_reduction <add>, %306, %cst_99 [1] : vector<8x128xf32> to vector<8xf32>
    %308 = vector.shape_cast %307 : vector<8xf32> to vector<8x1xf32>
    %cst_100 = arith.constant 3.125000e-02 : f32
    %309 = vector.broadcast %cst_100 : f32 to vector<8x1xf32>
    %310 = arith.mulf %308, %309 : vector<8x1xf32>
    %311 = vector.shape_cast %310 : vector<8x1xf32> to vector<8x1xf32>
    %312 = vector.broadcast %311 : vector<8x1xf32> to vector<8x128xf32>
    %313 = arith.select %284, %312, %304 : vector<8x128xi1>, vector<8x128xf32>
    %cst_101 = arith.constant 0.000000e+00 : f32
    %314 = vector.broadcast %cst_101 : f32 to vector<8x128xf32>
    %315 = arith.select %289, %271, %314 : vector<8x128xi1>, vector<8x128xf32>
    %cst_102 = arith.constant dense<0.000000e+00> : vector<8xf32>
    %316 = vector.multi_reduction <add>, %315, %cst_102 [1] : vector<8x128xf32> to vector<8xf32>
    %317 = vector.shape_cast %316 : vector<8xf32> to vector<8x1xf32>
    %cst_103 = arith.constant 3.125000e-02 : f32
    %318 = vector.broadcast %cst_103 : f32 to vector<8x1xf32>
    %319 = arith.mulf %317, %318 : vector<8x1xf32>
    %320 = vector.shape_cast %319 : vector<8x1xf32> to vector<8x1xf32>
    %321 = vector.broadcast %320 : vector<8x1xf32> to vector<8x128xf32>
    %322 = arith.select %289, %321, %313 : vector<8x128xi1>, vector<8x128xf32>
    %cst_104 = arith.constant 0.000000e+00 : f32
    %323 = vector.broadcast %cst_104 : f32 to vector<8x128xf32>
    %324 = arith.select %294, %271, %323 : vector<8x128xi1>, vector<8x128xf32>
    %cst_105 = arith.constant dense<0.000000e+00> : vector<8xf32>
    %325 = vector.multi_reduction <add>, %324, %cst_105 [1] : vector<8x128xf32> to vector<8xf32>
    %326 = vector.shape_cast %325 : vector<8xf32> to vector<8x1xf32>
    %cst_106 = arith.constant 3.125000e-02 : f32
    %327 = vector.broadcast %cst_106 : f32 to vector<8x1xf32>
    %328 = arith.mulf %326, %327 : vector<8x1xf32>
    %329 = vector.shape_cast %328 : vector<8x1xf32> to vector<8x1xf32>
    %330 = vector.broadcast %329 : vector<8x1xf32> to vector<8x128xf32>
    %331 = arith.select %294, %330, %322 : vector<8x128xi1>, vector<8x128xf32>
    %332 = arith.subf %271, %331 : vector<8x128xf32>
    %cst_107 = arith.constant 0.000000e+00 : f32
    %333 = vector.broadcast %cst_107 : f32 to vector<8x128xf32>
    %334 = arith.mulf %332, %332 : vector<8x128xf32>
    %cst_108 = arith.constant 0.000000e+00 : f32
    %335 = vector.broadcast %cst_108 : f32 to vector<8x128xf32>
    %336 = arith.select %279, %334, %335 : vector<8x128xi1>, vector<8x128xf32>
    %cst_109 = arith.constant dense<0.000000e+00> : vector<8xf32>
    %337 = vector.multi_reduction <add>, %336, %cst_109 [1] : vector<8x128xf32> to vector<8xf32>
    %338 = vector.shape_cast %337 : vector<8xf32> to vector<8x1xf32>
    %cst_110 = arith.constant 3.125000e-02 : f32
    %339 = vector.broadcast %cst_110 : f32 to vector<8x1xf32>
    %340 = arith.mulf %338, %339 : vector<8x1xf32>
    %341 = vector.shape_cast %340 : vector<8x1xf32> to vector<8x1xf32>
    %342 = vector.broadcast %341 : vector<8x1xf32> to vector<8x128xf32>
    %343 = arith.select %279, %342, %333 : vector<8x128xi1>, vector<8x128xf32>
    %344 = arith.mulf %332, %332 : vector<8x128xf32>
    %cst_111 = arith.constant 0.000000e+00 : f32
    %345 = vector.broadcast %cst_111 : f32 to vector<8x128xf32>
    %346 = arith.select %284, %344, %345 : vector<8x128xi1>, vector<8x128xf32>
    %cst_112 = arith.constant dense<0.000000e+00> : vector<8xf32>
    %347 = vector.multi_reduction <add>, %346, %cst_112 [1] : vector<8x128xf32> to vector<8xf32>
    %348 = vector.shape_cast %347 : vector<8xf32> to vector<8x1xf32>
    %cst_113 = arith.constant 3.125000e-02 : f32
    %349 = vector.broadcast %cst_113 : f32 to vector<8x1xf32>
    %350 = arith.mulf %348, %349 : vector<8x1xf32>
    %351 = vector.shape_cast %350 : vector<8x1xf32> to vector<8x1xf32>
    %352 = vector.broadcast %351 : vector<8x1xf32> to vector<8x128xf32>
    %353 = arith.select %284, %352, %343 : vector<8x128xi1>, vector<8x128xf32>
    %354 = arith.mulf %332, %332 : vector<8x128xf32>
    %cst_114 = arith.constant 0.000000e+00 : f32
    %355 = vector.broadcast %cst_114 : f32 to vector<8x128xf32>
    %356 = arith.select %289, %354, %355 : vector<8x128xi1>, vector<8x128xf32>
    %cst_115 = arith.constant dense<0.000000e+00> : vector<8xf32>
    %357 = vector.multi_reduction <add>, %356, %cst_115 [1] : vector<8x128xf32> to vector<8xf32>
    %358 = vector.shape_cast %357 : vector<8xf32> to vector<8x1xf32>
    %cst_116 = arith.constant 3.125000e-02 : f32
    %359 = vector.broadcast %cst_116 : f32 to vector<8x1xf32>
    %360 = arith.mulf %358, %359 : vector<8x1xf32>
    %361 = vector.shape_cast %360 : vector<8x1xf32> to vector<8x1xf32>
    %362 = vector.broadcast %361 : vector<8x1xf32> to vector<8x128xf32>
    %363 = arith.select %289, %362, %353 : vector<8x128xi1>, vector<8x128xf32>
    %364 = arith.mulf %332, %332 : vector<8x128xf32>
    %cst_117 = arith.constant 0.000000e+00 : f32
    %365 = vector.broadcast %cst_117 : f32 to vector<8x128xf32>
    %366 = arith.select %294, %364, %365 : vector<8x128xi1>, vector<8x128xf32>
    %cst_118 = arith.constant dense<0.000000e+00> : vector<8xf32>
    %367 = vector.multi_reduction <add>, %366, %cst_118 [1] : vector<8x128xf32> to vector<8xf32>
    %368 = vector.shape_cast %367 : vector<8xf32> to vector<8x1xf32>
    %cst_119 = arith.constant 3.125000e-02 : f32
    %369 = vector.broadcast %cst_119 : f32 to vector<8x1xf32>
    %370 = arith.mulf %368, %369 : vector<8x1xf32>
    %371 = vector.shape_cast %370 : vector<8x1xf32> to vector<8x1xf32>
    %372 = vector.broadcast %371 : vector<8x1xf32> to vector<8x128xf32>
    %373 = arith.select %294, %372, %363 : vector<8x128xi1>, vector<8x128xf32>
    %cst_120 = arith.constant 9.99999974E-6 : f32
    %374 = vector.broadcast %cst_120 : f32 to vector<8x128xf32>
    %375 = arith.addf %373, %374 : vector<8x128xf32>
    %376 = math.rsqrt %375 : vector<8x128xf32>
    %377 = arith.mulf %332, %376 : vector<8x128xf32>
    %378 = vector.broadcast %272 : vector<1x128xf32> to vector<8x128xf32>
    %379 = arith.mulf %377, %378 : vector<8x128xf32>
    %380 = vector.broadcast %273 : vector<1x128xf32> to vector<8x128xf32>
    %381 = arith.addf %379, %380 : vector<8x128xf32>
    %cst_121 = arith.constant 0.000000e+00 : f32
    %382 = vector.broadcast %cst_121 : f32 to vector<8x128xf32>
    %383 = arith.maximumf %381, %382 : vector<8x128xf32>
    %384 = arith.truncf %383 : vector<8x128xf32> to vector<8x128xbf16>
    %c576 = arith.constant 576 : index
    %c0_122 = arith.constant 0 : index
    %385 = vector.load %arg1[%c576, %c0_122] : memref<704x256xbf16, #tpu.memory_space<vmem>>, vector<128x128xbf16>
    %cst_123 = arith.constant dense<0.000000e+00> : vector<8x128xf32>
    %386 = tpu.matmul %384, %385, %cst_123 {dimension_numbers = #tpu.dot_dimension_numbers<[1], [0], [0], [1], [0, 0, 1, 1], [], []>} : vector<8x128xbf16>, vector<128x128xbf16>, vector<8x128xf32> -> vector<8x128xf32>
    %c9 = arith.constant 9 : index
    %c0_124 = arith.constant 0 : index
    %387 = vector.load %arg2[%c9, %c0_124] : memref<16x256xf32, #tpu.memory_space<vmem>>, vector<1x128xf32>
    %388 = vector.broadcast %387 : vector<1x128xf32> to vector<8x128xf32>
    %389 = arith.addf %386, %388 : vector<8x128xf32>
    %390 = arith.negf %389 : vector<8x128xf32>
    %391 = math.exp %390 : vector<8x128xf32>
    %cst_125 = arith.constant 1.000000e+00 : f32
    %392 = vector.broadcast %cst_125 : f32 to vector<8x128xf32>
    %393 = arith.addf %392, %391 : vector<8x128xf32>
    %394 = arith.divf %392, %393 : vector<8x128xf32>
    %395 = vector.extract_strided_slice %0 {offsets = [0, 3], sizes = [8, 1], strides = [1, 1]} : vector<8x4xi32> to vector<8x1xi32>
    %396 = tpu.iota {dimensions = array<i32: 1>} : vector<8x128xi32>
    %397 = tpu.iota {dimensions = array<i32: 1>} : vector<8x2xi32>
    %cst_126 = arith.constant 0.000000e+00 : f32
    %398 = vector.broadcast %cst_126 : f32 to vector<8x2xf32>
    %cst_127 = arith.constant 0.000000e+00 : f32
    %399 = vector.broadcast %cst_127 : f32 to vector<8x1xf32>
    %c0_i32_128 = arith.constant 0 : i32
    %400 = vector.broadcast %c0_i32_128 : i32 to vector<8x128xi32>
    %401 = arith.cmpi eq, %396, %400 : vector<8x128xi32>
    %c0_i32_129 = arith.constant 0 : i32
    %402 = vector.broadcast %c0_i32_129 : i32 to vector<8x1xi32>
    %403 = arith.cmpi eq, %395, %402 : vector<8x1xi32>
    %404 = vector.broadcast %403 : vector<8x1xi1> to vector<8x128xi1>
    %405 = arith.andi %401, %404 : vector<8x128xi1>
    %cst_130 = arith.constant 0.000000e+00 : f32
    %406 = vector.broadcast %cst_130 : f32 to vector<8x128xf32>
    %407 = arith.select %405, %394, %406 : vector<8x128xi1>, vector<8x128xf32>
    %cst_131 = arith.constant dense<0.000000e+00> : vector<8xf32>
    %408 = vector.multi_reduction <add>, %407, %cst_131 [1] : vector<8x128xf32> to vector<8xf32>
    %409 = vector.shape_cast %408 : vector<8xf32> to vector<8x1xf32>
    %410 = arith.addf %399, %409 : vector<8x1xf32>
    %c1_i32 = arith.constant 1 : i32
    %411 = vector.broadcast %c1_i32 : i32 to vector<8x128xi32>
    %412 = arith.cmpi eq, %396, %411 : vector<8x128xi32>
    %c1_i32_132 = arith.constant 1 : i32
    %413 = vector.broadcast %c1_i32_132 : i32 to vector<8x1xi32>
    %414 = arith.cmpi eq, %395, %413 : vector<8x1xi32>
    %415 = vector.broadcast %414 : vector<8x1xi1> to vector<8x128xi1>
    %416 = arith.andi %412, %415 : vector<8x128xi1>
    %cst_133 = arith.constant 0.000000e+00 : f32
    %417 = vector.broadcast %cst_133 : f32 to vector<8x128xf32>
    %418 = arith.select %416, %394, %417 : vector<8x128xi1>, vector<8x128xf32>
    %cst_134 = arith.constant dense<0.000000e+00> : vector<8xf32>
    %419 = vector.multi_reduction <add>, %418, %cst_134 [1] : vector<8x128xf32> to vector<8xf32>
    %420 = vector.shape_cast %419 : vector<8xf32> to vector<8x1xf32>
    %421 = arith.addf %410, %420 : vector<8x1xf32>
    %c0_i32_135 = arith.constant 0 : i32
    %422 = vector.broadcast %c0_i32_135 : i32 to vector<8x2xi32>
    %423 = arith.cmpi eq, %397, %422 : vector<8x2xi32>
    %424 = vector.shape_cast %421 : vector<8x1xf32> to vector<8x1xf32>
    %425 = vector.broadcast %424 : vector<8x1xf32> to vector<8x2xf32>
    %426 = arith.select %423, %425, %398 : vector<8x2xi1>, vector<8x2xf32>
    %cst_136 = arith.constant 0.000000e+00 : f32
    %427 = vector.broadcast %cst_136 : f32 to vector<8x1xf32>
    %c2_i32 = arith.constant 2 : i32
    %428 = vector.broadcast %c2_i32 : i32 to vector<8x128xi32>
    %429 = arith.cmpi eq, %396, %428 : vector<8x128xi32>
    %c0_i32_137 = arith.constant 0 : i32
    %430 = vector.broadcast %c0_i32_137 : i32 to vector<8x1xi32>
    %431 = arith.cmpi eq, %395, %430 : vector<8x1xi32>
    %432 = vector.broadcast %431 : vector<8x1xi1> to vector<8x128xi1>
    %433 = arith.andi %429, %432 : vector<8x128xi1>
    %cst_138 = arith.constant 0.000000e+00 : f32
    %434 = vector.broadcast %cst_138 : f32 to vector<8x128xf32>
    %435 = arith.select %433, %394, %434 : vector<8x128xi1>, vector<8x128xf32>
    %cst_139 = arith.constant dense<0.000000e+00> : vector<8xf32>
    %436 = vector.multi_reduction <add>, %435, %cst_139 [1] : vector<8x128xf32> to vector<8xf32>
    %437 = vector.shape_cast %436 : vector<8xf32> to vector<8x1xf32>
    %438 = arith.addf %427, %437 : vector<8x1xf32>
    %c3_i32 = arith.constant 3 : i32
    %439 = vector.broadcast %c3_i32 : i32 to vector<8x128xi32>
    %440 = arith.cmpi eq, %396, %439 : vector<8x128xi32>
    %c1_i32_140 = arith.constant 1 : i32
    %441 = vector.broadcast %c1_i32_140 : i32 to vector<8x1xi32>
    %442 = arith.cmpi eq, %395, %441 : vector<8x1xi32>
    %443 = vector.broadcast %442 : vector<8x1xi1> to vector<8x128xi1>
    %444 = arith.andi %440, %443 : vector<8x128xi1>
    %cst_141 = arith.constant 0.000000e+00 : f32
    %445 = vector.broadcast %cst_141 : f32 to vector<8x128xf32>
    %446 = arith.select %444, %394, %445 : vector<8x128xi1>, vector<8x128xf32>
    %cst_142 = arith.constant dense<0.000000e+00> : vector<8xf32>
    %447 = vector.multi_reduction <add>, %446, %cst_142 [1] : vector<8x128xf32> to vector<8xf32>
    %448 = vector.shape_cast %447 : vector<8xf32> to vector<8x1xf32>
    %449 = arith.addf %438, %448 : vector<8x1xf32>
    %c1_i32_143 = arith.constant 1 : i32
    %450 = vector.broadcast %c1_i32_143 : i32 to vector<8x2xi32>
    %451 = arith.cmpi eq, %397, %450 : vector<8x2xi32>
    %452 = vector.shape_cast %449 : vector<8x1xf32> to vector<8x1xf32>
    %453 = vector.broadcast %452 : vector<8x1xf32> to vector<8x2xf32>
    %454 = arith.select %451, %453, %426 : vector<8x2xi1>, vector<8x2xf32>
    %c0_144 = arith.constant 0 : index
    %c0_145 = arith.constant 0 : index
    %455 = vector.load %arg3[%c0_144, %c0_145] : memref<8x2xf32, #tpu.memory_space<vmem>>, vector<8x2xf32>
    tpu.vector_store %arg3[%c0_144, %c0_145], %454 {strides = array<i32>} : memref<8x2xf32, #tpu.memory_space<vmem>>, vector<8x2xf32>,
    return
  }
}

</mosaic_0001>

<bundles_post_ra>
// kernel: mlp7_forward.1
= control target key start
LH: loop header
LB: loop body
LE: loop exit
PB: predicated region body
PF: predicated region fallthrough
CT: control target
= control target key end

     0   :  { %8 = vsyncpa [#allocation3], 0  ;;  %s1499_s0 = inlined_call_operand.vmem [shape: s32[8,4], index: 0, kind: input, shape index: {}]   ;;  %s1500_s1 = inlined_call_operand.hbm [shape: bf16[704,256], index: 1, kind: input, shape index: {}]   ;;  %s1501_s2 = inlined_call_operand.hbm [shape: f32[16,256], index: 2, kind: input, shape index: {}]   ;;  %s1502_s3 = inlined_call_operand.vmem [shape: f32[8,2], index: 3, kind: output, shape index: {}]  }
   0x1   :  { %9 = vsyncpa [#allocation5], 0  ;;  %s1257_s12 = smov [#allocation2]  }
   0x2   :  { %s17_s13 = sshll.u32 %s1257_s12, 4  ;;  %s18_s13 = int_to_ptr.vmem [resolvable:$true] %s17_s13 }
   0x3   :  { %s1221_s14 = scalar_lea.vmem %s18_s13, 11264  ;;  %p1226_p1 = scmp.lt.s32.totalorder %s18_s13, %s18_s13 }
   0x4   :  { %p1222_p0 = scmp.ne.s32.totalorder %s18_s13, %s1221_s14  ;;  %p1227_p2 = scmp.lt.s32.totalorder %s1221_s14, %s1221_s14 }
   0x6   :  { %p1228_p3 = por %p1227_p2, %p1226_p1 }
   0x8   :  { %p1229_p4 = pnand %p1228_p3, %p1222_p0 }
   0xa   :  { %1232 = shalt.err (!%p1229_p4)
}
   0xb   :  { %s1258_s15 = smov 128   ;;  %s1259_s16 = smov 8  }
   0xc   :  { %23 = dma.hbm_to_vmem [thread:$0]  %s1500_s1, 11264, %s18_s13, [#allocation3], %s1258_s15, %s1258_s15, %s1259_s16  }
   0xd   :  { %s1260_s19 = smov [#allocation4]  }
   0xe   :  { %s29_s20 = sshll.u32 %s1260_s19, 4  ;;  %s30_s20 = int_to_ptr.vmem [resolvable:$true] %s29_s20 }
   0xf   :  { %s1241_s21 = scalar_lea.vmem %s30_s20, 512  ;;  %p1246_p6 = scmp.lt.s32.totalorder %s30_s20, %s30_s20 }
  0x10   :  { %p1242_p5 = scmp.ne.s32.totalorder %s30_s20, %s1241_s21  ;;  %p1247_p7 = scmp.lt.s32.totalorder %s1241_s21, %s1241_s21 }
  0x12   :  { %p1248_p8 = por %p1247_p7, %p1246_p6 }
  0x14   :  { %p1249_p9 = pnand %p1248_p8, %p1242_p5 }
  0x16   :  { %1252 = shalt.err (!%p1249_p9)
}
  0x17   :  { %s1261_s22 = smov 256   ;;  %s1262_s23 = smov 16  }
  0x18   :  { %35 = dma.hbm_to_vmem [thread:$0]  %s1501_s2, 512, %s30_s20, [#allocation5], %s1261_s22, %s1261_s22, %s1262_s23  }
  0x19   :  { %1253 = dma.done.wait [#allocation3], 11264  }
  0x1a   :  { %1254 = vsyncadd [#allocation3], 4294956032 }
  0x1b   :  { %1255 = dma.done.wait [#allocation5], 512  }
  0x1c   :  { %1256 = vsyncadd [#allocation5], 4294966784  ;;  %v1263_v0 = vmov 0   ;;  %v1264_v1 = vmov 2   ;;  %v1265_v2 = vmov 0.0   ;;  %v1301_v3 = vld [vmem:[%s1499_s0] sm:$0xff]  ;;  %v44_v26 = vlaneseq }
  0x1d   :  { %1136 = vset.pattern.permute.xlu0 %v1263_v0  ;;  %1138 = vset.pattern.permute.xlu1 %v1264_v1  ;;  %v61_v4 = vadd.s32 30, %v1301_v3  ;;  %v1141_v5 = vld [vmem:[#allocation2 + $0x30] ss:$8 sps:$4 sm:$0xff]   ;;  %v53_v6 = vadd.s32 10, %v1301_v3  ;;  %v1142_v7 = vld [vmem:[#allocation2 + $0x20] ss:$8 sps:$4 sm:$0xff]  }
  0x1e   :  { %1072 = vmatprep.subr.bf16.mxu0 %v1265_v2  ;;  %287 = vmatprep.mubr.bf16.mxu1 %v1263_v0  ;;  %v1266_v8 = vmov 1   ;;  %v1143_v9 = vld [vmem:[#allocation2 + $0x10] ss:$8 sps:$4 sm:$0xff]   ;;  %vm1267_vm0 = vmmov 0   ;;  %v1145_v10 = vld [vmem:[#allocation2 + $0xb4] ss:$8 sps:$4 sm:$0xff]  }
  0x1f   :  { %47 = vperm.xlu0 %1136, %v1301_v3   ;;  %63 = vperm.xlu1 %1138, %v61_v4   ;;  %v1147_v11 = vld [vmem:[#allocation2 + $0xb0] ss:$8 sps:$4 sm:$0xff]   ;;  %v1148_v12 = vld [vmem:[#allocation2 + $0xa4] ss:$8 sps:$4 sm:$0xff]   ;;  %v1144_v13 = vld [vmem:[#allocation2] ss:$8 sps:$4 sm:$0xff]  }
  0x20   :  { %1073 = vmatpush3.bf16.msra.mxu0 %v1141_v5  ;;  %1080 = vmatprep.mubr.msk.bf16.mxu0 %vm1267_vm0, %v1265_v2  ;;  %v1150_v14 = vld [vmem:[#allocation2 + $0xa0] ss:$8 sps:$4 sm:$0xff]   ;;  %v1151_v15 = vld [vmem:[#allocation2 + $0x94] ss:$8 sps:$4 sm:$0xff]   ;;  %v1153_v16 = vld [vmem:[#allocation2 + $0x90] ss:$8 sps:$4 sm:$0xff]  }
  0x21   :  { %1074 = vmatprep.subr.bf16.mxu0 %v1265_v2  ;;  %255 = vmatprep.subr.bf16.mxu1 %v1145_v10  ;;  %v1154_v17 = vld [vmem:[#allocation2 + $0x84] ss:$8 sps:$4 sm:$0xff]   ;;  %v1156_v18 = vld [vmem:[#allocation2 + $0x80] ss:$8 sps:$4 sm:$0xff]   ;;  %v1157_v19 = vld [vmem:[#allocation2 + $0x74] ss:$8 sps:$4 sm:$0xff]  }
  0x22   :  { %256 = vmatpush1.bf16.msra.mxu1 %v1147_v11  ;;  %v1159_v20 = vld [vmem:[#allocation2 + $0x70] ss:$8 sps:$4 sm:$0xff]   ;;  %v1160_v21 = vld [vmem:[#allocation2 + $0x64] ss:$8 sps:$4 sm:$0xff]   ;;  %v1162_v22 = vld [vmem:[#allocation2 + $0x60] ss:$8 sps:$4 sm:$0xff]  }
  0x23   :  { %1137 = vset.pattern.permute.xlu0 %v1266_v8  ;;  %257 = vmatprep.subr.bf16.mxu1 %v1148_v12  ;;  %v1163_v23 = vld [vmem:[#allocation2 + $0x54] ss:$8 sps:$4 sm:$0xff]   ;;  %v1165_v24 = vld [vmem:[#allocation2 + $0x50] ss:$8 sps:$4 sm:$0xff]   ;;  %v1166_v25 = vld [vmem:[#allocation2 + $0x44] ss:$8 sps:$4 sm:$0xff]  }
  0x24   :  { %55 = vperm.xlu0 %1137, %v53_v6   ;;  %1075 = vmatpush3.bf16.msra.mxu0 %v1142_v7  ;;  %v1311_v27 = vand.u32 127, %v44_v26  ;;  %vm102_vm4 = vcmask 523264   ;;  %v1168_v37 = vld [vmem:[#allocation2 + $0x40] ss:$8 sps:$4 sm:$0xff]   ;;  %v166_v43 = vshrl.u32 %v44_v26, 7  ;;  %vm937_vm15 = vcmp.eq.s32.totalorder %v1301_v3, 1 }
  0x25   :  { %1076 = vmatprep.subr.bf16.mxu0 %v1265_v2  ;;  %v163_v45 = vld [vmem:[#allocation4] ss:$8 sm:$0x3] }
  0x26   :  { %258 = vmatpush1.bf16.msra.mxu1 %v1150_v14  ;;  %v1322_v44 = vsub.s32 0, %v166_v43  ;;  %v1324_v46 = vsub.s32 1, %v166_v43  ;;  %v1328_v48 = vadd.s32 128, %v1311_v27  ;;  %vm303_vm5 = vcmp.lt.s32.totalorder %v1311_v27, 64  ;;  %v1176_v26 = vld [vmem:[#allocation2 + $0x100] ss:$8 sps:$4 sm:$0xff]  }
  0x27   :  { %259 = vmatprep.subr.bf16.mxu1 %v1151_v15  ;;  %vm307_vm7 = vcmp.ge.s32.totalorder %v1311_v27, 64  ;;  %vm602_vm9 = vcmp.ge.s32.totalorder %v1311_v27, 32  ;;  %vm600_vm11 = vcmp.lt.s32.totalorder %v1311_v27, 32  ;;  %vm604_vm12 = vcmp.lt.s32.totalorder %v1311_v27, 96 }
  0x28   :  { %1077 = vmatpush3.bf16.msra.mxu0 %v1143_v9  ;;  %v168_v47 = vrot.slane %v163_v45, %v1322_v44  ;;  %v172_v49 = vrot.slane %v163_v45, %v1324_v46  ;;  %vm316_vm6 = vcmp.lt.s32.totalorder %v1328_v48, 192  ;;  %vm320_vm8 = vcmp.ge.s32.totalorder %v1328_v48, 192  ;;  %vm1387_vm10 = vmand %vm602_vm9, %vm303_vm5 }
  0x29   :  { %1078 = vmatprep.subr.bf16.mxu0 %v1265_v2  ;;  %vm1399_vm13 = vmand %vm307_vm7, %vm604_vm12  ;;  %vm606_vm14 = vcmp.ge.s32.totalorder %v1311_v27, 96  ;;  %vm955_vm9 = vcmp.eq.s32.totalorder %v1311_v27, 3 }
  0x2a   :  { %260 = vmatpush1.bf16.msra.mxu1 %v1153_v16 }
  0x2b   :  { %261 = vmatprep.subr.bf16.mxu1 %v1154_v17 }
  0x2c   :  { %1079 = vmatpush3.bf16.msra.mxu0 %v1144_v13 }
  0x2e   :  { %262 = vmatpush1.bf16.msra.mxu1 %v1156_v18 }
  0x2f   :  { %263 = vmatprep.subr.bf16.mxu1 %v1157_v19  ;;  %v1169_v19 = vld [vmem:[#allocation2 + $0x1b0] ss:$8 sps:$4 sm:$0xff]  }
  0x30   :  { %1032 = vmatprep.subr.bf16.mxu0 %v1169_v19 }
  0x32   :  { %264 = vmatpush1.bf16.msra.mxu1 %v1159_v20  ;;  %v1170_v20 = vld [vmem:[#allocation2 + $0x130] ss:$8 sps:$4 sm:$0xff]  }
  0x33   :  { %265 = vmatprep.subr.bf16.mxu1 %v1160_v21  ;;  %v1171_v21 = vld [vmem:[#allocation2 + $0x1a0] ss:$8 sps:$4 sm:$0xff]  }
  0x36   :  { %266 = vmatpush1.bf16.msra.mxu1 %v1162_v22  ;;  %v1172_v22 = vld [vmem:[#allocation2 + $0x120] ss:$8 sps:$4 sm:$0xff]  }
  0x37   :  { %267 = vmatprep.subr.bf16.mxu1 %v1163_v23  ;;  %v1173_v23 = vld [vmem:[#allocation2 + $0x190] ss:$8 sps:$4 sm:$0xff]  }
  0x3a   :  { %268 = vmatpush1.bf16.msra.mxu1 %v1165_v24  ;;  %v1174_v24 = vld [vmem:[#allocation2 + $0x110] ss:$8 sps:$4 sm:$0xff]  }
  0x3b   :  { %269 = vmatprep.subr.bf16.mxu1 %v1166_v25  ;;  %v1175_v25 = vld [vmem:[#allocation2 + $0x180] ss:$8 sps:$4 sm:$0xff]  }
  0x3e   :  { %270 = vmatpush1.bf16.msra.mxu1 %v1168_v37 }
  0x3f   :  { %1084 = vmatprep.subr.bf16.mxu1 %v1265_v2 }
  0x9a   :  { %v48_v28 = vpop.permute.xlu0 %47  ;;  %v64_v29 = vpop.permute.xlu1 %63 }
  0x9b   :  { %vm49_vm1 = vcmp.eq.s32.totalorder %v1311_v27, %v48_v28  ;;  %vm65_vm2 = vcmp.eq.s32.totalorder %v1311_v27, %v64_v29  ;;  %v1177_v28 = vld [vmem:[#allocation2 + $0x170] ss:$8 sps:$4 sm:$0xff]  }
  0x9c   :  { %v970_v31 = vsel %vm49_vm1, 1.0, %v1265_v2  ;;  %v972_v33 = vsel %vm65_vm2, 1.0, %v1265_v2  ;;  %v1178_v29 = vld [vmem:[#allocation2 + $0xf0] ss:$8 sps:$4 sm:$0xff]   ;;  %vm936_vm2 = vcmp.eq.s32.totalorder %v1311_v27, 1 }
  0x9f   :  { %v56_v30 = vpop.permute.xlu0 %55 }
  0xa0   :  { %vm57_vm3 = vcmp.eq.s32.totalorder %v1311_v27, %v56_v30  ;;  %v1179_v30 = vld [vmem:[#allocation2 + $0x160] ss:$8 sps:$4 sm:$0xff]  }
  0xa1   :  { %v971_v32 = vsel %vm57_vm3, 1.0, %v1265_v2 }
  0xa2   :  { %v60_v34 = vadd.f32 %v971_v32, %v970_v31  ;;  %v1180_v31 = vld [vmem:[#allocation2 + $0xe0] ss:$8 sps:$4 sm:$0xff]   ;;  %v1181_v32 = vld [vmem:[#allocation2 + $0x150] ss:$8 sps:$4 sm:$0xff]  }
  0xa4   :  { %v68_v35 = vadd.f32 %v972_v33, %v60_v34  ;;  %v1182_v33 = vld [vmem:[#allocation2 + $0xd0] ss:$8 sps:$4 sm:$0xff]   ;;  %v1183_v34 = vld [vmem:[#allocation2 + $0x140] ss:$8 sps:$4 sm:$0xff]  }
  0xa6   :  { %v69_v36 = vpack.c.bf16 %v68_v35, %v68_v35  ;;  %v1184_v35 = vld [vmem:[#allocation2 + $0xc0] ss:$8 sps:$4 sm:$0xff]  }
  0xa8   :  { %1081 = vmatmul.mubr.msk.bf16.vlgmr.msra.gmra.mxu0 %vm102_vm4, %v69_v36  ;;  %vm924_vm4 = vcmp.eq.s32.totalorder %v1311_v27, 0 }
  0xa9   :  { %1033 = vmatpush3.bf16.msra.mxu0 %v1170_v20 }
  0xaa   :  { %1034 = vmatprep.subr.bf16.mxu0 %v1171_v21 }
  0xad   :  { %1035 = vmatpush3.bf16.msra.mxu0 %v1172_v22 }
  0xae   :  { %1036 = vmatprep.subr.bf16.mxu0 %v1173_v23 }
  0xb1   :  { %1037 = vmatpush3.bf16.msra.mxu0 %v1174_v24 }
  0xb2   :  { %1038 = vmatprep.subr.bf16.mxu0 %v1175_v25 }
  0xb5   :  { %1039 = vmatpush3.bf16.msra.mxu0 %v1176_v26 }
  0xb6   :  { %1040 = vmatprep.subr.bf16.mxu0 %v1177_v28 }
  0xb9   :  { %1041 = vmatpush3.bf16.msra.mxu0 %v1178_v29 }
  0xba   :  { %1042 = vmatprep.subr.bf16.mxu0 %v1179_v30 }
  0xbd   :  { %1043 = vmatpush3.bf16.msra.mxu0 %v1180_v31 }
  0xbe   :  { %1044 = vmatprep.subr.bf16.mxu0 %v1181_v32 }
  0xc1   :  { %1045 = vmatpush3.bf16.msra.mxu0 %v1182_v33 }
  0xc2   :  { %1046 = vmatprep.subr.bf16.mxu0 %v1183_v34 }
  0xc5   :  { %1047 = vmatpush3.bf16.msra.mxu0 %v1184_v35 }
  0xc6   :  { %1104 = vmatprep.subr.bf16.mxu0 %v1265_v2 }
 0x168   :  { %v140_v38 = vpop.f32.mrf.mxu0 }
 0x169   :  { %v146_v39 = vpack.c.bf16 %v140_v38, %v140_v38 }
 0x16a   :  { %v1082_v40 = vpop.f32.mrf.mxu0 }
 0x16b   :  { %288 = vmatmul.mubr.bf16.vlgmr.msra.gmra.mxu1 %v146_v39 }
 0x16c   :  { %v143_v41 = vpop.f32.mrf.mxu0  ;;  %1100 = vmatprep.mubr.msk.bf16.mxu1 %vm1267_vm0, %v1265_v2 }
 0x16e   :  { %v1083_v42 = vpop.f32.mrf.mxu0 }
 0x22b   :  { %v289_v50 = vpop.f32.mrf.mxu1 }
 0x22c   :  { %v290_v51 = vadd.f32 %v289_v50, %v168_v47 }
 0x22d   :  { %v291_v52 = vpop.f32.mrf.mxu1 }
 0x22e   :  { %v292_v53 = vadd.f32 %v291_v52, %v172_v49  ;;  %v325_v54 = vsel %vm303_vm5, %v290_v51, 0.0  ;;  %v333_v58 = vsel %vm307_vm7, %v290_v51, 0.0 }
 0x22f   :  { %v293_v55 = vpop.f32.mrf.mxu1  ;;  %328 = vadd.xlane.f32.xlu0 %v325_v54  ;;  %v299_v54 = vld [vmem:[#allocation4 + $0x2] ss:$8 sm:$0x3] }
 0x230   :  { %v342_v56 = vsel %vm316_vm6, %v292_v53, 0.0  ;;  %v350_v59 = vsel %vm320_vm8, %v292_v53, 0.0  ;;  %v420_v48 = vrot.slane %v299_v54, %v1324_v46 }
 0x231   :  { %v294_v57 = vpop.f32.mrf.mxu1  ;;  %344 = vadd.xlane.f32.xlu1 %v342_v56 }
 0x233   :  { %336 = vadd.xlane.f32.xlu0 %v333_v58  ;;  %v416_v58 = vrot.slane %v299_v54, %v1322_v44 }
 0x235   :  { %352 = vadd.xlane.f32.xlu1 %v350_v59 }
 0x2b8   :  { %v329_v60 = vpop.xlane.xlu0 %328 }
 0x2b9   :  { %v330_v61 = vmul.f32 0.015625, %v329_v60 }
 0x2ba   :  { %v345_v62 = vpop.xlane.xlu1 %344 }
 0x2bb   :  { %v346_v63 = vmul.f32 0.015625, %v345_v62  ;;  %v331_v5 = vsel %vm303_vm5, %v330_v61, 0.0 }
 0x2bc   :  { %v337_v1 = vpop.xlane.xlu0 %336 }
 0x2bd   :  { %v338_v4 = vmul.f32 0.015625, %v337_v1  ;;  %v348_v9 = vsel %vm316_vm6, %v346_v63, 0.0 }
 0x2be   :  { %v353_v6 = vpop.xlane.xlu1 %352 }
 0x2bf   :  { %v339_v7 = vsel %vm307_vm7, %v338_v4, %v331_v5  ;;  %v354_v8 = vmul.f32 0.015625, %v353_v6 }
 0x2c0   :  { %v1349_v10 = vsub.f32 %v290_v51, %v339_v7 }
 0x2c1   :  { %v356_v11 = vsel %vm320_vm8, %v354_v8, %v348_v9  ;;  %v461_v9 = vld [vmem:[#allocation4 + $0x3] ss:$0 sm:$0xff] }
 0x2c2   :  { %v359_v12 = vmul.f32 %v1349_v10, %v1349_v10  ;;  %v1355_v13 = vsub.f32 %v292_v53, %v356_v11  ;;  %v297_v53 = vld [vmem:[#allocation4 + $0x1] ss:$8 sm:$0x3] }
 0x2c3   :  { %v403_v55 = vrot.slane %v297_v53, %v1322_v44  ;;  %v407_v57 = vrot.slane %v297_v53, %v1324_v46 }
 0x2c4   :  { %v361_v14 = vsel %vm303_vm5, %v359_v12, 0.0  ;;  %v360_v15 = vmul.f32 %v1355_v13, %v1355_v13  ;;  %v369_v17 = vsel %vm307_vm7, %v359_v12, 0.0 }
 0x2c5   :  { %364 = vadd.xlane.f32.xlu0 %v361_v14 }
 0x2c6   :  { %v378_v16 = vsel %vm316_vm6, %v360_v15, 0.0  ;;  %v386_v18 = vsel %vm320_vm8, %v360_v15, 0.0 }
 0x2c7   :  { %380 = vadd.xlane.f32.xlu1 %v378_v16 }
 0x2c9   :  { %372 = vadd.xlane.f32.xlu0 %v369_v17 }
 0x2cb   :  { %388 = vadd.xlane.f32.xlu1 %v386_v18 }
 0x34e   :  { %v365_v36 = vpop.xlane.xlu0 %364 }
 0x34f   :  { %v366_v37 = vmul.f32 0.015625, %v365_v36 }
 0x350   :  { %v381_v38 = vpop.xlane.xlu1 %380 }
 0x351   :  { %v382_v39 = vmul.f32 0.015625, %v381_v38  ;;  %v367_v42 = vsel %vm303_vm5, %v366_v37, 0.0 }
 0x352   :  { %v373_v40 = vpop.xlane.xlu0 %372 }
 0x353   :  { %v374_v41 = vmul.f32 0.015625, %v373_v40  ;;  %v384_v49 = vsel %vm316_vm6, %v382_v39, 0.0  ;;  %v1185_v39 = vld [vmem:[#allocation2 + $0x230] ss:$8 sps:$4 sm:$0xff]   ;;  %v1186_v40 = vld [vmem:[#allocation2 + $0x220] ss:$8 sps:$4 sm:$0xff]  }
 0x354   :  { %v389_v43 = vpop.xlane.xlu1 %388  ;;  %1085 = vmatpush3.bf16.msra.mxu1 %v1185_v39  ;;  %v1194_v39 = vld [vmem:[#allocation2 + $0x2a0] ss:$8 sps:$4 sm:$0xff]  }
 0x355   :  { %v375_v45 = vsel %vm307_vm7, %v374_v41, %v367_v42  ;;  %v390_v47 = vmul.f32 0.015625, %v389_v43  ;;  %1086 = vmatprep.subr.bf16.mxu1 %v1265_v2  ;;  %v1187_v41 = vld [vmem:[#allocation2 + $0x210] ss:$8 sps:$4 sm:$0xff]   ;;  %v1188_v42 = vld [vmem:[#allocation2 + $0x200] ss:$8 sps:$4 sm:$0xff]   ;;  %vm949_vm7 = vcmp.eq.s32.totalorder %v1311_v27, 2 }
 0x356   :  { %v393_v50 = vadd.f32 1e-05, %v375_v45  ;;  %v1189_v43 = vld [vmem:[#allocation2 + $0x1f0] ss:$8 sps:$4 sm:$0xff]   ;;  %v1190_v45 = vld [vmem:[#allocation2 + $0x1e0] ss:$8 sps:$4 sm:$0xff]  }
 0x357   :  { %v392_v51 = vsel %vm320_vm8, %v390_v47, %v384_v49  ;;  %v1191_v47 = vld [vmem:[#allocation2 + $0x1d0] ss:$8 sps:$4 sm:$0xff]   ;;  %v1192_v49 = vld [vmem:[#allocation2 + $0x1c0] ss:$8 sps:$4 sm:$0xff]  }
 0x358   :  { %1201 = vrsqrt.f32 %v393_v50  ;;  %v394_v52 = vadd.f32 1e-05, %v392_v51  ;;  %1087 = vmatpush3.bf16.msra.mxu1 %v1186_v40  ;;  %v1195_v40 = vld [vmem:[#allocation2 + $0x290] ss:$8 sps:$4 sm:$0xff]  }
 0x359   :  { %1088 = vmatprep.subr.bf16.mxu1 %v1265_v2 }
 0x35a   :  { %1203 = vrsqrt.f32 %v394_v52 }
 0x35c   :  { %1089 = vmatpush3.bf16.msra.mxu1 %v1187_v41  ;;  %v1196_v41 = vld [vmem:[#allocation2 + $0x280] ss:$8 sps:$4 sm:$0xff]  }
 0x35d   :  { %1090 = vmatprep.subr.bf16.mxu1 %v1265_v2 }
 0x360   :  { %1091 = vmatpush3.bf16.msra.mxu1 %v1188_v42  ;;  %v1197_v42 = vld [vmem:[#allocation2 + $0x270] ss:$8 sps:$4 sm:$0xff]  }
 0x361   :  { %1092 = vmatprep.subr.bf16.mxu1 %v1265_v2 }
 0x364   :  { %1093 = vmatpush3.bf16.msra.mxu1 %v1189_v43  ;;  %v1198_v43 = vld [vmem:[#allocation2 + $0x260] ss:$8 sps:$4 sm:$0xff]  }
 0x365   :  { %v1202_v56 = vpop.eup %1201  ;;  %1094 = vmatprep.subr.bf16.mxu1 %v1265_v2 }
 0x366   :  { %v397_v59 = vmul.f32 %v1202_v56, %v1349_v10 }
 0x367   :  { %v1204_v60 = vpop.eup %1203 }
 0x368   :  { %v398_v61 = vmul.f32 %v1204_v60, %v1355_v13  ;;  %v410_v62 = vmul.f32 %v403_v55, %v397_v59  ;;  %1095 = vmatpush3.bf16.msra.mxu1 %v1190_v45  ;;  %v1199_v45 = vld [vmem:[#allocation2 + $0x250] ss:$8 sps:$4 sm:$0xff]  }
 0x369   :  { %1096 = vmatprep.subr.bf16.mxu1 %v1265_v2 }
 0x36a   :  { %v411_v63 = vmul.f32 %v407_v57, %v398_v61  ;;  %v423_v1 = vadd.f32 %v416_v58, %v410_v62 }
 0x36c   :  { %v424_v4 = vadd.f32 %v420_v48, %v411_v63  ;;  %v425_v5 = vmax.f32 %v423_v1, 0.0  ;;  %1097 = vmatpush3.bf16.msra.mxu1 %v1191_v47  ;;  %v598_v63 = vld [vmem:[#allocation4 + $0x4] ss:$0 sm:$0xff]  ;;  %v1200_v47 = vld [vmem:[#allocation2 + $0x240] ss:$8 sps:$4 sm:$0xff]  }
 0x36d   :  { %1098 = vmatprep.subr.bf16.mxu1 %v1265_v2 }
 0x36e   :  { %v426_v6 = vmax.f32 %v424_v4, 0.0  ;;  %v427_v8 = vpack.c.bf16 %v425_v5, %v425_v5  ;;  %v599_v4 = vld [vmem:[#allocation4 + $0x5] ss:$0 sm:$0xff] }
 0x370   :  { %v428_v7 = vpack.c.bf16 %v426_v6, %v426_v6  ;;  %1099 = vmatpush3.bf16.msra.mxu1 %v1192_v49  ;;  %v1268_v49 = vmov 3  }
 0x371   :  { %1139 = vset.pattern.permute.xlu1 %v1268_v49  ;;  %1140 = vset.pattern.permute.xlu0 %v1268_v49 }
 0x372   :  { %590 = vmatprep.mubr.bf16.mxu0 %v428_v7 }
 0x373   :  { %591 = vmatmul.mubr.bf16.vlgmr.msra.gmra.mxu0 %v427_v8 }
 0x374   :  { %1120 = vmatprep.mubr.msk.bf16.mxu0 %vm1267_vm0, %v1265_v2  ;;  %vm925_vm0 = vcmp.eq.s32.totalorder %v1301_v3, 0 }
 0x433   :  { %v1048_v44 = vpop.f32.mrf.mxu0 }
 0x435   :  { %v1049_v10 = vpop.f32.mrf.mxu0 }
 0x436   :  { %v1050_v11 = vadd.f32 %v1049_v10, %v1048_v44  ;;  %v673_v44 = vld [vmem:[#allocation4 + $0x6] ss:$0 sm:$0xff] }
 0x437   :  { %v1051_v12 = vpop.f32.mrf.mxu0 }
 0x438   :  { %v593_v13 = vadd.f32 %v1050_v11, %v461_v9 }
 0x439   :  { %v1052_v14 = vpop.f32.mrf.mxu0 }
 0x43a   :  { %v613_v15 = vsel %vm1387_vm10, %v593_v13, 0.0  ;;  %v608_v16 = vsel %vm600_vm11, %v593_v13, 0.0  ;;  %v623_v18 = vsel %vm606_vm14, %v593_v13, 0.0  ;;  %v618_v19 = vsel %vm1399_vm13, %v593_v13, 0.0 }
 0x43b   :  { %614 = vadd.xlane.f32.xlu0 %v613_v15  ;;  %609 = vadd.xlane.f32.xlu1 %v608_v16 }
 0x43f   :  { %624 = vadd.xlane.f32.xlu0 %v623_v18  ;;  %619 = vadd.xlane.f32.xlu1 %v618_v19 }
 0x4c4   :  { %v615_v20 = vpop.xlane.xlu0 %614  ;;  %v610_v21 = vpop.xlane.xlu1 %609 }
 0x4c5   :  { %v611_v22 = vmul.f32 0.03125, %v610_v21  ;;  %v616_v23 = vmul.f32 0.03125, %v615_v20 }
 0x4c7   :  { %v612_v24 = vsel %vm600_vm11, %v611_v22, 0.0 }
 0x4c8   :  { %v625_v25 = vpop.xlane.xlu0 %624  ;;  %v620_v26 = vpop.xlane.xlu1 %619  ;;  %v617_v30 = vsel %vm1387_vm10, %v616_v23, %v612_v24 }
 0x4c9   :  { %v626_v28 = vmul.f32 0.03125, %v625_v25  ;;  %v621_v29 = vmul.f32 0.03125, %v620_v26 }
 0x4cb   :  { %v622_v31 = vsel %vm1399_vm13, %v621_v29, %v617_v30 }
 0x4cc   :  { %v627_v32 = vsel %vm606_vm14, %v626_v28, %v622_v31 }
 0x4cd   :  { %v628_v33 = vsub.f32 %v593_v13, %v627_v32 }
 0x4cf   :  { %v629_v34 = vmul.f32 %v628_v33, %v628_v33 }
 0x4d1   :  { %v635_v35 = vsel %vm1387_vm10, %v629_v34, 0.0  ;;  %v630_v36 = vsel %vm600_vm11, %v629_v34, 0.0  ;;  %v645_v37 = vsel %vm606_vm14, %v629_v34, 0.0  ;;  %v640_v38 = vsel %vm1399_vm13, %v629_v34, 0.0 }
 0x4d2   :  { %636 = vadd.xlane.f32.xlu0 %v635_v35  ;;  %631 = vadd.xlane.f32.xlu1 %v630_v36 }
 0x4d6   :  { %646 = vadd.xlane.f32.xlu0 %v645_v37  ;;  %641 = vadd.xlane.f32.xlu1 %v640_v38  ;;  %v1193_v38 = vld [vmem:[#allocation2 + $0x2b0] ss:$8 sps:$4 sm:$0xff]  }
 0x4d7   :  { %1105 = vmatpush3.bf16.msra.mxu0 %v1193_v38 }
 0x4d8   :  { %1106 = vmatprep.subr.bf16.mxu0 %v1265_v2 }
 0x4db   :  { %1107 = vmatpush3.bf16.msra.mxu0 %v1194_v39 }
 0x4dc   :  { %1108 = vmatprep.subr.bf16.mxu0 %v1265_v2 }
 0x4df   :  { %1109 = vmatpush3.bf16.msra.mxu0 %v1195_v40 }
 0x4e0   :  { %1110 = vmatprep.subr.bf16.mxu0 %v1265_v2 }
 0x4e3   :  { %1111 = vmatpush3.bf16.msra.mxu0 %v1196_v41 }
 0x4e4   :  { %1112 = vmatprep.subr.bf16.mxu0 %v1265_v2 }
 0x4e7   :  { %1113 = vmatpush3.bf16.msra.mxu0 %v1197_v42 }
 0x4e8   :  { %1114 = vmatprep.subr.bf16.mxu0 %v1265_v2 }
 0x4eb   :  { %1115 = vmatpush3.bf16.msra.mxu0 %v1198_v43 }
 0x4ec   :  { %1116 = vmatprep.subr.bf16.mxu0 %v1265_v2 }
 0x4ef   :  { %1117 = vmatpush3.bf16.msra.mxu0 %v1199_v45 }
 0x4f0   :  { %1118 = vmatprep.subr.bf16.mxu0 %v1265_v2 }
 0x4f3   :  { %1119 = vmatpush3.bf16.msra.mxu0 %v1200_v47 }
 0x55b   :  { %v637_v50 = vpop.xlane.xlu0 %636  ;;  %v632_v51 = vpop.xlane.xlu1 %631 }
 0x55c   :  { %v633_v52 = vmul.f32 0.03125, %v632_v51  ;;  %v638_v53 = vmul.f32 0.03125, %v637_v50  ;;  %v938_v50 = vsel %vm937_vm15, 1, %v1263_v0  ;;  %v926_v51 = vsel %vm925_vm0, 1, %v1263_v0 }
 0x55e   :  { %v634_v54 = vsel %vm600_vm11, %v633_v52, 0.0 }
 0x55f   :  { %v647_v55 = vpop.xlane.xlu0 %646  ;;  %v642_v56 = vpop.xlane.xlu1 %641  ;;  %v639_v59 = vsel %vm1387_vm10, %v638_v53, %v634_v54 }
 0x560   :  { %v648_v57 = vmul.f32 0.03125, %v647_v55  ;;  %v643_v58 = vmul.f32 0.03125, %v642_v56 }
 0x562   :  { %v644_v60 = vsel %vm1399_vm13, %v643_v58, %v639_v59 }
 0x563   :  { %v649_v61 = vsel %vm606_vm14, %v648_v57, %v644_v60 }
 0x564   :  { %v650_v48 = vadd.f32 1e-05, %v649_v61 }
 0x566   :  { %1205 = vrsqrt.f32 %v650_v48 }
 0x573   :  { %v1206_v62 = vpop.eup %1205 }
 0x574   :  { %v652_v1 = vmul.f32 %v1206_v62, %v628_v33  ;;  %v762_v62 = vld [vmem:[#allocation4 + $0x7] ss:$0 sm:$0xff] }
 0x576   :  { %v653_v5 = vmul.f32 %v652_v1, %v598_v63  ;;  %v763_v1 = vld [vmem:[#allocation4 + $0x10] ss:$0 sm:$0xff] }
 0x578   :  { %v654_v6 = vadd.f32 %v653_v5, %v599_v4 }
 0x57a   :  { %v655_v7 = vmax.f32 %v654_v6, 0.0 }
 0x57c   :  { %v656_v8 = vpack.c.bf16 %v655_v7, %v655_v7 }
 0x57e   :  { %1101 = vmatmul.mubr.bf16.vlgmr.msra.gmra.mxu1 %v656_v8  ;;  %v829_v8 = vld [vmem:[#allocation4 + $0x11] ss:$0 sm:$0xff] }
 0x63e   :  { %v756_v9 = vpop.f32.mrf.mxu1 }
 0x63f   :  { %v757_v10 = vadd.f32 %v756_v9, %v673_v44 }
 0x640   :  { %v1102_v11 = vpop.f32.mrf.mxu1 }
 0x641   :  { %v769_v12 = vsel %vm1387_vm10, %v757_v10, 0.0  ;;  %v764_v13 = vsel %vm600_vm11, %v757_v10, 0.0  ;;  %v779_v16 = vsel %vm606_vm14, %v757_v10, 0.0  ;;  %v774_v18 = vsel %vm1399_vm13, %v757_v10, 0.0 }
 0x642   :  { %770 = vadd.xlane.f32.xlu0 %v769_v12  ;;  %765 = vadd.xlane.f32.xlu1 %v764_v13  ;;  %v759_v14 = vpop.f32.mrf.mxu1 }
 0x644   :  { %v1103_v15 = vpop.f32.mrf.mxu1 }
 0x646   :  { %780 = vadd.xlane.f32.xlu0 %v779_v16  ;;  %775 = vadd.xlane.f32.xlu1 %v774_v18 }
 0x6cb   :  { %v771_v19 = vpop.xlane.xlu0 %770  ;;  %v766_v20 = vpop.xlane.xlu1 %765 }
 0x6cc   :  { %v767_v21 = vmul.f32 0.03125, %v766_v20  ;;  %v772_v22 = vmul.f32 0.03125, %v771_v19 }
 0x6ce   :  { %v768_v23 = vsel %vm600_vm11, %v767_v21, 0.0 }
 0x6cf   :  { %v781_v24 = vpop.xlane.xlu0 %780  ;;  %v776_v25 = vpop.xlane.xlu1 %775  ;;  %v773_v29 = vsel %vm1387_vm10, %v772_v22, %v768_v23 }
 0x6d0   :  { %v782_v26 = vmul.f32 0.03125, %v781_v24  ;;  %v777_v28 = vmul.f32 0.03125, %v776_v25 }
 0x6d2   :  { %v778_v30 = vsel %vm1399_vm13, %v777_v28, %v773_v29 }
 0x6d3   :  { %v783_v31 = vsel %vm606_vm14, %v782_v26, %v778_v30 }
 0x6d4   :  { %v784_v32 = vsub.f32 %v757_v10, %v783_v31 }
 0x6d6   :  { %v785_v33 = vmul.f32 %v784_v32, %v784_v32 }
 0x6d8   :  { %v791_v34 = vsel %vm1387_vm10, %v785_v33, 0.0  ;;  %v786_v35 = vsel %vm600_vm11, %v785_v33, 0.0  ;;  %v801_v36 = vsel %vm606_vm14, %v785_v33, 0.0  ;;  %v796_v37 = vsel %vm1399_vm13, %v785_v33, 0.0 }
 0x6d9   :  { %792 = vadd.xlane.f32.xlu0 %v791_v34  ;;  %787 = vadd.xlane.f32.xlu1 %v786_v35 }
 0x6dd   :  { %802 = vadd.xlane.f32.xlu0 %v801_v36  ;;  %797 = vadd.xlane.f32.xlu1 %v796_v37 }
 0x6ee   :  { %928 = vperm.xlu1 %1139, %v926_v51  }
 0x6f3   :  { %940 = vperm.xlu0 %1140, %v938_v50  }
 0x762   :  { %v793_v52 = vpop.xlane.xlu0 %792  ;;  %v788_v53 = vpop.xlane.xlu1 %787 }
 0x763   :  { %v789_v54 = vmul.f32 0.03125, %v788_v53  ;;  %v794_v55 = vmul.f32 0.03125, %v793_v52 }
 0x765   :  { %v790_v2 = vsel %vm600_vm11, %v789_v54, 0.0  ;;  %vm962_vm11 = vcmask 15360  }
 0x766   :  { %v803_v56 = vpop.xlane.xlu0 %802  ;;  %v798_v57 = vpop.xlane.xlu1 %797  ;;  %v795_v59 = vsel %vm1387_vm10, %v794_v55, %v790_v2 }
 0x767   :  { %v804_v58 = vmul.f32 0.03125, %v803_v56  ;;  %v799_v3 = vmul.f32 0.03125, %v798_v57 }
 0x769   :  { %v800_v60 = vsel %vm1399_vm13, %v799_v3, %v795_v59 }
 0x76a   :  { %v805_v0 = vsel %vm606_vm14, %v804_v58, %v800_v60  ;;  %v929_v15 = vpop.permute.xlu1 %928 }
 0x76b   :  { %v806_v61 = vadd.f32 1e-05, %v805_v0  ;;  %vm930_vm3 = vcmp.eq.s32.totalorder %v929_v15, 1 }
 0x76c   :  { %vm931_vm6 = vmand %vm924_vm4, %vm930_vm3 }
 0x76d   :  { %1207 = vrsqrt.f32 %v806_v61  ;;  %vm950_vm8 = vmand %vm949_vm7, %vm930_vm3 }
 0x76e   :  { %v941_v14 = vpop.permute.xlu0 %940 }
 0x76f   :  { %vm942_vm1 = vcmp.eq.s32.totalorder %v941_v14, 1 }
 0x770   :  { %vm943_vm5 = vmand %vm936_vm2, %vm942_vm1 }
 0x771   :  { %vm956_vm10 = vmand %vm955_vm9, %vm942_vm1 }
 0x77a   :  { %v1208_v48 = vpop.eup %1207 }
 0x77b   :  { %v808_v63 = vmul.f32 %v1208_v48, %v784_v32 }
 0x77d   :  { %v809_v4 = vmul.f32 %v808_v63, %v762_v62 }
 0x77f   :  { %v810_v5 = vadd.f32 %v809_v4, %v763_v1 }
 0x781   :  { %v811_v6 = vmax.f32 %v810_v5, 0.0 }
 0x783   :  { %v812_v7 = vpack.c.bf16 %v811_v6, %v811_v6 }
 0x785   :  { %1121 = vmatmul.mubr.bf16.vlgmr.msra.gmra.mxu0 %v812_v7 }
 0x845   :  { %v912_v46 = vpop.f32.mrf.mxu0 }
 0x846   :  { %v913_v44 = vadd.f32 %v912_v46, %v829_v8 }
 0x847   :  { %v1122_v9 = vpop.f32.mrf.mxu0 }
 0x848   :  { %v1026_v17 = vmul.f32 -1.442695, %v913_v44 }
 0x849   :  { %v915_v10 = vpop.f32.mrf.mxu0 }
 0x84a   :  { %1209 = vpow2.f32 %v1026_v17 }
 0x84b   :  { %v1123_v11 = vpop.f32.mrf.mxu0 }
 0x857   :  { %v1210_v12 = vpop.eup %1209 }
 0x858   :  { %v921_v13 = vadd.f32 1.0, %v1210_v12 }
 0x85a   :  { %1211 = vrcp.f32 %v921_v13 }
 0x867   :  { %v1212_v16 = vpop.eup %1211 }
 0x868   :  { %v944_v18 = vsel %vm943_vm5, %v1212_v16, 0.0  ;;  %v932_v19 = vsel %vm931_vm6, %v1212_v16, 0.0  ;;  %v951_v20 = vsel %vm950_vm8, %v1212_v16, 0.0  ;;  %v957_v21 = vsel %vm956_vm10, %v1212_v16, 0.0 }
 0x869   :  { %945 = vadd.xlane.f32.xlu0 %v944_v18  ;;  %933 = vadd.xlane.f32.xlu1 %v932_v19 }
 0x86d   :  { %952 = vadd.xlane.f32.xlu1 %v951_v20 }
 0x871   :  { %958 = vadd.xlane.f32.xlu1 %v957_v21 }
 0x8f2   :  { %v934_v22 = vpop.xlane.xlu1 %933  ;;  %v946_v23 = vpop.xlane.xlu0 %945 }
 0x8f3   :  { %v947_v25 = vadd.f32 %v946_v23, %v934_v22 }
 0x8f5   :  { %v948_v29 = vsel %vm924_vm4, %v947_v25, 0.0 }
 0x8f6   :  { %v953_v24 = vpop.xlane.xlu1 %952 }
 0x8fa   :  { %v959_v26 = vpop.xlane.xlu1 %958 }
 0x8fb   :  { %v960_v28 = vadd.f32 %v959_v26, %v953_v24 }
 0x8fd   :  { %v961_v30 = vsel %vm936_vm2, %v960_v28, %v948_v29 }
 0x8fe   :  { %963 = vst.msk [vmem:[%s1502_s3] sm:$0xff] %vm962_vm11, %v961_v30 }
 0x8ff   :  { %968 = vsyncpa [#allocation3], 1 }
 0x900   :  { %969 = vsyncpa [#allocation5], 1 }

</bundles_post_ra>
